<compile_context>
chip_gen: v6e
topology: v6e:2x2x1
jax: 0.10.0
libtpu: 0.0.40
codegen_flags: <defaults>
</compile_context>

<pallas_src>
import math

import jax
import jax.numpy as jnp
from jax.experimental import pallas as pl
from jax.experimental.pallas import tpu as pltpu


# ----------------------------- elementwise helpers -----------------------------
def _erf(z):
    # Abramowitz & Stegun 7.1.26 polynomial erf (|error| <= 1.5e-7).
    # mul/add on the VPU; exp + approx-reciprocal on the EUP (separate slot).
    sign = jnp.where(z >= 0.0, 1.0, -1.0)
    az = jnp.abs(z)
    t = pl.reciprocal(1.0 + 0.3275911 * az, approx=True)
    poly = t * (0.254829592
                + t * (-0.284496736
                       + t * (1.421413741
                              + t * (-1.453152027
                                     + t * 1.061405429))))
    return sign * (1.0 - poly * jnp.exp(-az * az))


def _gelu_exact(x):
    # torch.nn.GELU() default ('none' approximation): 0.5*x*(1 + erf(x/sqrt(2)))
    return 0.5 * x * (1.0 + _erf(x * (1.0 / math.sqrt(2.0))))


# --------------------------------- the kernel ----------------------------------
def _mlp_kernel(x_ref, w1_ref, b1_ref, w2_ref, b2_ref, o_ref):
    # fc1: bf16 operands on the MXU, f32 accumulation, f32 bias add.
    h = jnp.dot(x_ref[...].astype(jnp.bfloat16), w1_ref[...],
                preferred_element_type=jnp.float32) + b1_ref[...]
    # GELU (exact erf form, matching nn.GELU default) in f32.
    h = _gelu_exact(h)
    # Dropout(p=0.0) is the identity -> nothing to do.
    # fc2: cast h to bf16 only at the dot boundary, f32 accumulation + bias.
    y = jnp.dot(h.astype(jnp.bfloat16), w2_ref[...],
                preferred_element_type=jnp.float32) + b2_ref[...]
    o_ref[...] = y.astype(o_ref.dtype)


# ----------------------------------- wrapper ------------------------------------
def _round_up(x, m):
    return ((x + m - 1) // m) * m


def mlp_forward(x, params, *, tile_m=512, interpret=False):
    """x: (..., in_features). Returns (..., out_features) with x's dtype."""
    w1, b1, w2, b2 = params["w1"], params["b1"], params["w2"], params["b2"]
    in_f, hid = w1.shape
    out_f = w2.shape[1]
    assert x.shape[-1] == in_f, (x.shape, in_f)

    lead = x.shape[:-1]
    x2 = x.reshape(-1, in_f)                              # lane-dense, no dtype copy
    M = x2.shape[0]

    if M <= 8:
        tm = M                                            # full-dim block if tiny
    else:
        # Big tiles amortize the ~0.35us/step overhead; keep grid extent >= 2 so
        # both v7x TensorCores get work.  Tile is a multiple of 8 (sublane rule);
        # a partial tail block is masked automatically by Pallas.
        tm = min(tile_m, _round_up(pl.cdiv(M, 2), 8))
    grid = (pl.cdiv(M, tm),)

    flops = 2 * M * (in_f * hid + hid * out_f)
    bytes_accessed = (x2.size * x2.dtype.itemsize
                      + w1.size * w1.dtype.itemsize + b1.size * b1.dtype.itemsize
                      + w2.size * w2.dtype.itemsize + b2.size * b2.dtype.itemsize
                      + M * out_f * x.dtype.itemsize)

    out2 = pl.pallas_call(
        _mlp_kernel,
        out_shape=jax.ShapeDtypeStruct((M, out_f), x.dtype),
        grid=grid,
        in_specs=[
            pl.BlockSpec((tm, in_f), lambda m: (m, 0)),      # activations: row tiles
            pl.BlockSpec((in_f, hid), lambda m: (0, 0)),     # w1 (bf16): resident
            pl.BlockSpec((1, hid), lambda m: (0, 0)),        # b1 (f32):  resident
            pl.BlockSpec((hid, out_f), lambda m: (0, 0)),    # w2 (bf16): resident
            pl.BlockSpec((1, out_f), lambda m: (0, 0)),      # b2 (f32):  resident
        ],
        out_specs=pl.BlockSpec((tm, out_f), lambda m: (m, 0)),
        compiler_params=pltpu.CompilerParams(
            dimension_semantics=("parallel",)),
        cost_estimate=pl.CostEstimate(
            flops=flops, transcendentals=M * hid, bytes_accessed=bytes_accessed),
        interpret=interpret,
    )(x2, w1, b1, w2, b2)

    return out2.reshape(*lead, out_f)


# ------------------------- deterministic parameter init -------------------------
def init_params(key, in_features, hidden_features, out_features):
    """PyTorch nn.Linear-style init: U(-1/sqrt(fan_in), 1/sqrt(fan_in)) in f32.
    Weights are stored as (fan_in, fan_out) so the kernel computes x @ W (same math
    as torch's x @ W.T with W of shape (fan_out, fan_in))."""
    k1, k2, k3, k4 = jax.random.split(key, 4)

    def unif(k, shape, fan_in):
        bound = 1.0 / math.sqrt(fan_in)
        return jax.random.uniform(k, shape, jnp.float32, -bound, bound)

    return dict(
        w1=unif(k1, (in_features, hidden_features), in_features),
        b1=unif(k2, (1, hidden_features), in_features),
        w2=unif(k3, (hidden_features, out_features), hidden_features),
        b2=unif(k4, (1, out_features), hidden_features),
    )


def to_kernel_params(p):
    """bf16 weights (halve HBM traffic on the dominant streams), f32 biases."""
    return dict(w1=p["w1"].astype(jnp.bfloat16), b1=p["b1"],
                w2=p["w2"].astype(jnp.bfloat16), b2=p["b2"])


# --------------------------- pure-JAX reference check ----------------------------
def reference_forward(x, params):
    # Upcast the (bf16-stored) weights so both sides see identical weights; the
    # only remaining delta vs the kernel is the bf16 MXU operand rounding.
    xf = x.astype(jnp.float32)
    w1 = params["w1"].astype(jnp.float32)
    w2 = params["w2"].astype(jnp.float32)
    h = jnp.einsum("...i,ij->...j", xf, w1, precision="highest") + params["b1"][0]
    h = jax.nn.gelu(h, approximate=False)        # exact erf GELU (nn.GELU default)
    y = jnp.einsum("...i,ij->...j", h, w2, precision="highest") + params["b2"][0]
    return y


# ------------------------------------- main --------------------------------------
# TODO(synk): stochastic dropout (drop > 0 in training mode) is not implemented;
#             the module default drop=0.0 (and eval mode) makes Dropout an identity.
if __name__ == "__main__":
    key = jax.random.PRNGKey(0)
    B, N = 2, 128                     # batch of token sequences, (B, N, C) layout
    IN, HID, OUT = 128, 256, 128      # in_features, hidden_features, out_features
    k_x, k_p = jax.random.split(key)

    x = jax.random.normal(k_x, (B, N, IN), jnp.float32)
    master = init_params(k_p, IN, HID, OUT)
    params = to_kernel_params(master)

    out = jax.block_until_ready(mlp_forward(x, params))
    ref = jax.block_until_ready(reference_forward(x, params))

    assert out.shape == (B, N, OUT), out.shape
    err = float(jnp.max(jnp.abs(out.astype(jnp.float32) - ref)))
    # Kernel feeds bf16 operands to the MXU (f32 accumulation); reference is exact
    # f32 with identical (bf16-rounded) weights -> allow bf16 rounding headroom.
    assert err < 2e-2, f"mismatch vs pure-JAX reference: {err}"
    print("KERNEL_OK")
</pallas_src>

<mosaic_0001>
module attributes {stable_mosaic.version = 11 : i64} {
  func.func @_mlp_kernel(%arg0: i32, %arg1: memref<128x128xf32, #tpu.memory_space<vmem>>, %arg2: memref<128x256xbf16, #tpu.memory_space<vmem>>, %arg3: memref<1x256xf32, #tpu.memory_space<vmem>>, %arg4: memref<256x128xbf16, #tpu.memory_space<vmem>>, %arg5: memref<1x128xf32, #tpu.memory_space<vmem>>, %arg6: memref<128x128xf32, #tpu.memory_space<vmem>>) attributes {dimension_semantics = [#tpu.dimension_semantics<parallel>], iteration_bounds = array<i64: 2>, scalar_prefetch = 0 : i64, scratch_operands = 0 : i64, tpu.core_type = #tpu.core_type<tc>, window_params = [{transform_indices = @transform_0, window_bounds = array<i64: 128, 128>}, {pipeline_mode = #tpu.pipeline_mode<synchronous>, transform_indices = @transform_1, window_bounds = array<i64: 128, 256>}, {pipeline_mode = #tpu.pipeline_mode<synchronous>, transform_indices = @transform_2, window_bounds = array<i64: 1, 256>}, {pipeline_mode = #tpu.pipeline_mode<synchronous>, transform_indices = @transform_3, window_bounds = array<i64: 256, 128>}, {pipeline_mode = #tpu.pipeline_mode<synchronous>, transform_indices = @transform_4, window_bounds = array<i64: 1, 128>}, {transform_indices = @transform_5, window_bounds = array<i64: 128, 128>}]} {
    %c0 = arith.constant 0 : index
    %c0_0 = arith.constant 0 : index
    %0 = vector.load %arg1[%c0, %c0_0] : memref<128x128xf32, #tpu.memory_space<vmem>>, vector<128x128xf32>
    %1 = arith.truncf %0 : vector<128x128xf32> to vector<128x128xbf16>
    %c0_1 = arith.constant 0 : index
    %c0_2 = arith.constant 0 : index
    %2 = vector.load %arg2[%c0_1, %c0_2] : memref<128x256xbf16, #tpu.memory_space<vmem>>, vector<128x256xbf16>
    %cst = arith.constant dense<0.000000e+00> : vector<128x256xf32>
    %3 = tpu.matmul %1, %2, %cst {dimension_numbers = #tpu.dot_dimension_numbers<[1], [0], [0], [1], [0, 0, 1, 1], [], []>} : vector<128x128xbf16>, vector<128x256xbf16>, vector<128x256xf32> -> vector<128x256xf32>
    %c0_3 = arith.constant 0 : index
    %c0_4 = arith.constant 0 : index
    %4 = vector.load %arg3[%c0_3, %c0_4] : memref<1x256xf32, #tpu.memory_space<vmem>>, vector<1x256xf32>
    %5 = vector.broadcast %4 : vector<1x256xf32> to vector<128x256xf32>
    %6 = arith.addf %3, %5 : vector<128x256xf32>
    %cst_5 = arith.constant 5.000000e-01 : f32
    %7 = vector.broadcast %cst_5 : f32 to vector<128x256xf32>
    %8 = arith.mulf %7, %6 : vector<128x256xf32>
    %cst_6 = arith.constant 0.707106769 : f32
    %9 = vector.broadcast %cst_6 : f32 to vector<128x256xf32>
    %10 = arith.mulf %6, %9 : vector<128x256xf32>
    %cst_7 = arith.constant 0.000000e+00 : f32
    %11 = vector.broadcast %cst_7 : f32 to vector<128x256xf32>
    %12 = arith.cmpf oge, %10, %11 : vector<128x256xf32>
    %cst_8 = arith.constant 1.000000e+00 : f32
    %cst_9 = arith.constant -1.000000e+00 : f32
    %13 = vector.broadcast %cst_8 : f32 to vector<128x256xf32>
    %14 = vector.broadcast %cst_9 : f32 to vector<128x256xf32>
    %15 = arith.select %12, %13, %14 : vector<128x256xi1>, vector<128x256xf32>
    %16 = math.absf %10 : vector<128x256xf32>
    %cst_10 = arith.constant 0.327591091 : f32
    %17 = vector.broadcast %cst_10 : f32 to vector<128x256xf32>
    %18 = arith.mulf %17, %16 : vector<128x256xf32>
    %cst_11 = arith.constant 1.000000e+00 : f32
    %19 = vector.broadcast %cst_11 : f32 to vector<128x256xf32>
    %20 = arith.addf %19, %18 : vector<128x256xf32>
    %21 = tpu.reciprocal %20 {approx = true} : vector<128x256xf32> -> vector<128x256xf32>
    %cst_12 = arith.constant 1.06140542 : f32
    %22 = vector.broadcast %cst_12 : f32 to vector<128x256xf32>
    %23 = arith.mulf %21, %22 : vector<128x256xf32>
    %cst_13 = arith.constant -1.45315206 : f32
    %24 = vector.broadcast %cst_13 : f32 to vector<128x256xf32>
    %25 = arith.addf %24, %23 : vector<128x256xf32>
    %26 = arith.mulf %21, %25 : vector<128x256xf32>
    %cst_14 = arith.constant 1.42141378 : f32
    %27 = vector.broadcast %cst_14 : f32 to vector<128x256xf32>
    %28 = arith.addf %27, %26 : vector<128x256xf32>
    %29 = arith.mulf %21, %28 : vector<128x256xf32>
    %cst_15 = arith.constant -0.284496725 : f32
    %30 = vector.broadcast %cst_15 : f32 to vector<128x256xf32>
    %31 = arith.addf %30, %29 : vector<128x256xf32>
    %32 = arith.mulf %21, %31 : vector<128x256xf32>
    %cst_16 = arith.constant 0.254829586 : f32
    %33 = vector.broadcast %cst_16 : f32 to vector<128x256xf32>
    %34 = arith.addf %33, %32 : vector<128x256xf32>
    %35 = arith.mulf %21, %34 : vector<128x256xf32>
    %cst_17 = arith.constant 0.000000e+00 : f32
    %36 = vector.broadcast %cst_17 : f32 to vector<128x256xf32>
    %37 = arith.subf %36, %16 : vector<128x256xf32>
    %38 = arith.mulf %37, %16 : vector<128x256xf32>
    %39 = math.exp %38 : vector<128x256xf32>
    %40 = arith.mulf %35, %39 : vector<128x256xf32>
    %cst_18 = arith.constant 1.000000e+00 : f32
    %41 = vector.broadcast %cst_18 : f32 to vector<128x256xf32>
    %42 = arith.subf %41, %40 : vector<128x256xf32>
    %43 = arith.mulf %15, %42 : vector<128x256xf32>
    %cst_19 = arith.constant 1.000000e+00 : f32
    %44 = vector.broadcast %cst_19 : f32 to vector<128x256xf32>
    %45 = arith.addf %44, %43 : vector<128x256xf32>
    %46 = arith.mulf %8, %45 : vector<128x256xf32>
    %47 = arith.truncf %46 : vector<128x256xf32> to vector<128x256xbf16>
    %c0_20 = arith.constant 0 : index
    %c0_21 = arith.constant 0 : index
    %48 = vector.load %arg4[%c0_20, %c0_21] : memref<256x128xbf16, #tpu.memory_space<vmem>>, vector<256x128xbf16>
    %cst_22 = arith.constant dense<0.000000e+00> : vector<128x128xf32>
    %49 = tpu.matmul %47, %48, %cst_22 {dimension_numbers = #tpu.dot_dimension_numbers<[1], [0], [0], [1], [0, 0, 1, 1], [], []>} : vector<128x256xbf16>, vector<256x128xbf16>, vector<128x128xf32> -> vector<128x128xf32>
    %c0_23 = arith.constant 0 : index
    %c0_24 = arith.constant 0 : index
    %50 = vector.load %arg5[%c0_23, %c0_24] : memref<1x128xf32, #tpu.memory_space<vmem>>, vector<1x128xf32>
    %51 = vector.broadcast %50 : vector<1x128xf32> to vector<128x128xf32>
    %52 = arith.addf %49, %51 : vector<128x128xf32>
    %c0_25 = arith.constant 0 : index
    %c0_26 = arith.constant 0 : index
    %53 = vector.load %arg6[%c0_25, %c0_26] : memref<128x128xf32, #tpu.memory_space<vmem>>, vector<128x128xf32>
    tpu.vector_store %arg6[%c0_25, %c0_26], %52 {strides = array<i32>} : memref<128x128xf32, #tpu.memory_space<vmem>>, vector<128x128xf32>,
    return
  }
  func.func @transform_0(%arg0: i32) -> (i32, i32) {
    %c0_i32 = arith.constant 0 : i32
    %c0_i32_0 = arith.constant 0 : i32
    return %arg0, %c0_i32 : i32, i32
  }
  func.func @transform_1(%arg0: i32) -> (i32, i32) {
    %c0_i32 = arith.constant 0 : i32
    %c0_i32_0 = arith.constant 0 : i32
    %c0_i32_1 = arith.constant 0 : i32
    return %c0_i32, %c0_i32_0 : i32, i32
  }
  func.func @transform_2(%arg0: i32) -> (i32, i32) {
    %c0_i32 = arith.constant 0 : i32
    %c0_i32_0 = arith.constant 0 : i32
    %c0_i32_1 = arith.constant 0 : i32
    return %c0_i32, %c0_i32_0 : i32, i32
  }
  func.func @transform_3(%arg0: i32) -> (i32, i32) {
    %c0_i32 = arith.constant 0 : i32
    %c0_i32_0 = arith.constant 0 : i32
    %c0_i32_1 = arith.constant 0 : i32
    return %c0_i32, %c0_i32_0 : i32, i32
  }
  func.func @transform_4(%arg0: i32) -> (i32, i32) {
    %c0_i32 = arith.constant 0 : i32
    %c0_i32_0 = arith.constant 0 : i32
    %c0_i32_1 = arith.constant 0 : i32
    return %c0_i32, %c0_i32_0 : i32, i32
  }
  func.func @transform_5(%arg0: i32) -> (i32, i32) {
    %c0_i32 = arith.constant 0 : i32
    %c0_i32_0 = arith.constant 0 : i32
    return %arg0, %c0_i32 : i32, i32
  }
}

</mosaic_0001>

<bundles_post_ra>
// kernel: tpu_custom_call.1
= control target key start
LH: loop header
LB: loop body
LE: loop exit
PB: predicated region body
PF: predicated region fallthrough
CT: control target
= control target key end

     0   :  { %10 = vsyncpa [#allocation3], 0  ;;  %s3510_s0 = inlined_call_operand.hbm [shape: f32[256,128], index: 0, kind: input, shape index: {}]   ;;  %s3511_s1 = inlined_call_operand.hbm [shape: bf16[128,256], index: 1, kind: input, shape index: {}]   ;;  %s3512_s2 = inlined_call_operand.vmem [shape: f32[1,256], index: 2, kind: input, shape index: {}]   ;;  %s3513_s3 = inlined_call_operand.hbm [shape: bf16[256,128], index: 3, kind: input, shape index: {}]   ;;  %s3514_s4 = inlined_call_operand.vmem [shape: f32[1,128], index: 4, kind: input, shape index: {}]   ;;  %s3515_s5 = inlined_call_operand.hbm [shape: f32[256,128], index: 5, kind: output, shape index: {}]  }
   0x1   :  { %12 = vsyncpa [#allocation3 + $0x1], 0 }
   0x2   :  { %13 = vsyncpa [#allocation6], 0 }
   0x3   :  { %14 = vsyncpa [#allocation4], 0 }
   0x4   :  { %16 = vsyncpa [#allocation4 + $0x1], 0  ;;  %s2274_s18 = smov 0   ;;  %s2276_s19 = smov 0  }
   0x5   :  { %s2278_s20 = smov 0   ;;  %s2280_s21 = smov 0  }
   0x6 LB: > { %s2295_s22 = sadd.s32 4294967295, %s2230_s21   ;;  %s1722_s23 = sadd.s32 4294967294, %s2230_s21   ;;  %s2230_s21 = sphi %s2280_s21, %s3664_s21   ;;  %s2226_s20 = sphi %s2278_s20, %s3663_s20   ;;  %s2222_s19 = sphi %s2276_s19, %s3662_s19   ;;  %s2218_s18 = sphi %s2274_s18, %s3661_s18  }
   0x7   : > { %p42_p0 = scmp.ne.s32.totalorder %s2222_s19, %s2218_s18  ;;  %p3516_p1 = scmp.eq.s32.totalorder %s2295_s22, 0 }
   0x8   : > { %p150_p2 = scmp.eq.s32.totalorder %s2295_s22, 1  ;;  %p156_p3 = scmp.eq.s32.totalorder %s1722_s23, 1 }
   0x9   : > { %p2304_p4 = por %p3516_p1, %p42_p0  ;;  %p1723_p5 = scmp.ge.s32.totalorder %s2230_s21, 1 }
   0xa   : > { %p2309_p6 = por %p156_p3, %p42_p0  ;;  %p163_p7 = scmp.lt.s32.totalorder %s2230_s21, 3 }
   0xb   : > { %s3551_s24 = scalar_select %p2304_p4, 1, 0 }
   0xc   : > { %s3552_s25 = scalar_select %p2309_p6, 1, 0 }
   0xd   : > { %p2314_p8 = pnand %p1723_p5, %p163_p7  ;;  %s2232_s27 = smov [#allocation5]  }
   0xe   : > { %s175_s28 = sshll.u32 %s2232_s27, 4  ;;  %s2233_s30 = smov [#allocation7]   ;;  %s176_s28 = int_to_ptr.vmem [resolvable:$true] %s175_s28 }
   0xf   : > { %s3553_s26 = scalar_select %p2314_p8, 1, 0 }
  0x10   : > { %p1851_p9 = pneg %p2314_p8  ;;  %s191_s6 = sshll.u32 %s2233_s30, 4  ;;  %s192_s6 = int_to_ptr.vmem [resolvable:$true] %s191_s6 }
  0x11   : > { %s2093_s7 = scalar_lea.vmem %s176_s28, 2048  ;;  %p2101_p5 = scmp.lt.s32.totalorder %s176_s28, %s176_s28 }
  0x12   : > { %p2323_p11 = pnand %p1851_p9, %p3516_p1  ;;  %p2094_p13 = scmp.ne.s32.totalorder %s176_s28, %s2093_s7 }
  0x13   : > { %p2102_p7 = scmp.lt.s32.totalorder %s2093_s7, %s2093_s7 }
  0x14   : > { %p2084_p12 = pneg %p2323_p11 }
  0x15   : > { %p2103_p10 = por %p2102_p7, %p2101_p5 }
  0x16   : > { %p2096_p0 = pnand %p2094_p13, %p2084_p12 }
  0x18   : > { %p2097_p3 = pneg %p2096_p0 }
  0x1a   : > { %p2104_p9 = pnand %p2103_p10, %p2097_p3 }
  0x1c   : > { %2107 = shalt.err (!%p2104_p9)
}
  0x1d   : > { %s3517_s8 = smov 128   ;;  %s2235_s9 = smov 8  }
  0x1e   : > { %1854 = dma.hbm_to_vmem [thread:$0]  (!%p2323_p11), %s3511_s1, 2048, %s176_s28, [#allocation6], %s3517_s8, %s3517_s8, %s2235_s9  }
  0x1f   : > { %s2119_s12 = scalar_lea.vmem %s192_s6, 2048  ;;  %p2127_p10 = scmp.lt.s32.totalorder %s192_s6, %s192_s6 }
  0x20   : > { %p2120_p13 = scmp.ne.s32.totalorder %s192_s6, %s2119_s12  ;;  %p2128_p3 = scmp.lt.s32.totalorder %s2119_s12, %s2119_s12 }
  0x22   : > { %p2122_p0 = pnand %p2120_p13, %p2084_p12  ;;  %p2129_p7 = por %p2128_p3, %p2127_p10 }
  0x24   : > { %p2123_p5 = pneg %p2122_p0 }
  0x26   : > { %p2130_p9 = pnand %p2129_p7, %p2123_p5 }
  0x28   : > { %2133 = shalt.err (!%p2130_p9)
}
  0x29   : > { %s2236_s13 = smov 64   ;;  %s2237_s14 = smov 4  }
  0x2a   : > { %1857 = dma.hbm_to_vmem [thread:$0]  (!%p2323_p11), %s3513_s3, 2048, %s192_s6, [#allocation6], %s2236_s13, %s2236_s13, %s2237_s14  }
  0x2b   : > { %s2349_s17 = sadd.s32 1, %s2230_s21   ;;  %s29_s27 = sadd.s32 1, %s2226_s20 }
  0x2c   : > { %s26_s23 = ssub.s32 %s2230_s21, %s2349_s17  ;;  %p36_p13 = scmp.ne.s32.totalorder %s2226_s20, %s2222_s19 }
  0x2d   : > { %p27_p12 = scmp.eq.s32.totalorder %s26_s23, 0  ;;  %p37_p0 = scmp.eq.s32.totalorder %s2230_s21, 0 }
  0x2e   : > { %p2362_p10 = por %p150_p2, %p36_p13  ;;  %p1868_p3 = scmp.lt.s32.totalorder %s2230_s21, 2 }
  0x2f   : > { %s2358_s28 = scalar_select %p27_p12, %s2226_s20, %s29_s27  }
  0x30   : > { %p38_p5 = por %p37_p0, %p36_p13  ;;  %s208_s29 = sand.u32 1, %s2226_s20  }
  0x31   : > { %s3555_s30 = scalar_select %p2362_p10, 1, 0 }
  0x32   : > { %s1727_s7 = sshll.u32 %s208_s29, 7  ;;  %s1773_s6 = sshll.u32 %s2230_s21, 11 }
  0x33   : > { %s2372_s12 = scalar_lea.hbm %s3510_s0, %s1773_s6  ;;  %s212_s13 = scalar_lea.vmem [#allocation2], %s1727_s7 }
  0x34   : > { %s219_s14 = sshll.u32 %s212_s13, 4  ;;  %p2376_p2 = pnand %p1868_p3, %p38_p5  ;;  %s2374_s14 = int_to_ptr.vmem [resolvable:$true] %s219_s14 }
  0x35   : > { %s2380_s16 = scalar_lea.sflag [#allocation3], %s208_s29  ;;  %s2134_s23 = scalar_lea.hbm %s2372_s12, 2048 }
  0x36   : > { %p2135_p11 = scmp.ne.s32.totalorder %s2372_s12, %s2134_s23  ;;  %p2136_p7 = pneg %p2376_p2 }
  0x37   : > { %s2139_s7 = scalar_lea.hbm %s3510_s0, 4096  ;;  %p2140_p13 = scmp.lt.s32.totalorder %s2372_s12, %s3510_s0 }
  0x38   : > { %p2137_p9 = pnand %p2136_p7, %p2135_p11  ;;  %p2141_p0 = scmp.lt.s32.totalorder %s2139_s7, %s2134_s23 }
  0x3a   : > { %p2138_p12 = pneg %p2137_p9  ;;  %p2142_p5 = por %p2141_p0, %p2140_p13 }
  0x3c   : > { %p2143_p3 = pnand %p2142_p5, %p2138_p12 }
  0x3e   : > { %2146 = shalt.err (!%p2143_p3)
}
  0x3f   : > { %s2147_s29 = scalar_lea.vmem %s2374_s14, 2048  ;;  %s2238_s13 = smov [#allocation2]  }
  0x40   : > { %p2148_p1 = scmp.ne.s32.totalorder %s2374_s14, %s2147_s29  ;;  %s2152_s8 = sshll.u32 %s2238_s13, 4  ;;  %s2153_s8 = int_to_ptr.vmem [resolvable:$false] %s2152_s8 }
  0x41   : > { %s2154_s27 = scalar_lea.vmem %s2153_s8, 4096  ;;  %p2155_p9 = scmp.lt.s32.totalorder %s2374_s14, %s2153_s8 }
  0x42   : > { %p2150_p6 = pnand %p2148_p1, %p2136_p7  ;;  %p2156_p10 = scmp.lt.s32.totalorder %s2154_s27, %s2147_s29 }
  0x44   : > { %p2151_p11 = pneg %p2150_p6  ;;  %p2157_p4 = por %p2156_p10, %p2155_p9 }
  0x46   : > { %p2158_p8 = pnand %p2157_p4, %p2151_p11 }
  0x48   : > { %2161 = shalt.err (!%p2158_p8)
}
  0x49   : > { %s3557_s23 = smov 128   ;;  %p3558_p1 = scmp.ne.s32.totalorder %s3553_s26, 0 }
  0x4a   : > { %1861 = dma.hbm_to_vmem [thread:$0]  (!%p2376_p2), %s2372_s12, 2048, %s2374_s14, %s2380_s16, %s3557_s23, %s3557_s23, %s2235_s9  }
  0x4b   : > { %231 = sbr.rel (%p3558_p1) target bundleno = 767 (0x2ff), region = 40 }
  0x50   : > { %s2407_s6 = sand.u32 1, %s2222_s19   ;;  %p3559_p4 = scmp.ne.s32.totalorder %s3551_s24, 0 }
  0x51   : > { %s1731_s8 = sshll.u32 %s2407_s6, 7  ;;  %s234_s7 = scalar_lea.sflag [#allocation3], %s2407_s6 }
  0x52   : > { %s2413_s15 = scalar_lea.vmem [#allocation2], %s1731_s8 }
  0x53   : > { %2205 = dma.done.wait (%p3559_p4), %s234_s7, 2048  }
  0x54   : > { %2207 = vsyncadd (%p3559_p4), %s234_s7, 4294965248  ;;  %p3560_p6 = scmp.eq.s32.totalorder %s2295_s22, 0 }
  0x56   : > { %2209 = dma.done.wait (%p3560_p6), [#allocation6], 4096   ;;  %p3561_p8 = pmov %p3560_p6 }
  0x57   : > { %v2239_v0 = vmov 0   ;;  %v1914_v1 = vld [vmem:[#allocation5 + $0x74] ss:$8 sps:$4 sm:$0xff]   ;;  %v1916_v2 = vld [vmem:[#allocation5 + $0x70] ss:$8 sps:$4 sm:$0xff]   ;;  %v275_v17 = vld [vmem:[%s2413_s15] sm:$0xff]  ;;  %v317_v50 = vlaneseq }
  0x58   : > { %2211 = vsyncadd (%p3561_p8), [#allocation6], 4294963200  ;;  %439 = vmatprep.mubr.bf16.mxu0 %v2239_v0  ;;  %407 = vmatprep.subr.bf16.mxu0 %v1914_v1  ;;  %v1917_v3 = vld [vmem:[#allocation5 + $0x64] ss:$8 sps:$4 sm:$0xff]   ;;  %v1919_v4 = vld [vmem:[#allocation5 + $0x60] ss:$8 sps:$4 sm:$0xff]  }
  0x59   : > { %408 = vmatpush1.bf16.msra.mxu0 %v1916_v2  ;;  %v1920_v5 = vld [vmem:[#allocation5 + $0x54] ss:$8 sps:$4 sm:$0xff]   ;;  %v1922_v6 = vld [vmem:[#allocation5 + $0x50] ss:$8 sps:$4 sm:$0xff]   ;;  %v1923_v7 = vld [vmem:[#allocation5 + $0x44] ss:$8 sps:$4 sm:$0xff]  }
  0x5a   : > { %409 = vmatprep.subr.bf16.mxu0 %v1917_v3  ;;  %v1925_v8 = vld [vmem:[#allocation5 + $0x40] ss:$8 sps:$4 sm:$0xff]   ;;  %v1926_v9 = vld [vmem:[#allocation5 + $0x34] ss:$8 sps:$4 sm:$0xff]   ;;  %v1928_v10 = vld [vmem:[#allocation5 + $0x30] ss:$8 sps:$4 sm:$0xff]  }
  0x5b   : > { %v1929_v11 = vld [vmem:[#allocation5 + $0x24] ss:$8 sps:$4 sm:$0xff]   ;;  %v1931_v12 = vld [vmem:[#allocation5 + $0x20] ss:$8 sps:$4 sm:$0xff]   ;;  %v1932_v13 = vld [vmem:[#allocation5 + $0x14] ss:$8 sps:$4 sm:$0xff]  }
  0x5c   : > { %v1934_v14 = vld [vmem:[#allocation5 + $0x10] ss:$8 sps:$4 sm:$0xff]   ;;  %v1935_v15 = vld [vmem:[#allocation5 + $0x4] ss:$8 sps:$4 sm:$0xff]   ;;  %v1937_v16 = vld [vmem:[#allocation5] ss:$8 sps:$4 sm:$0xff]  }
  0x5d   : > { %410 = vmatpush1.bf16.msra.mxu0 %v1919_v4  ;;  %v276_v18 = vld [vmem:[%s2413_s15 + $0x8] sm:$0xff]  ;;  %v277_v20 = vld [vmem:[%s2413_s15 + $0x10] sm:$0xff]  ;;  %v278_v21 = vld [vmem:[%s2413_s15 + $0x18] sm:$0xff]  ;;  %v318_v52 = vshrl.u32 %v317_v50, 7  ;;  %s3427_s14 = scalar_lea.vmem [#allocation8], %s1731_s8  ;;  %s1774_s16 = sshll.u32 %s2295_s22, 11 }
  0x5e   : > { %411 = vmatprep.subr.bf16.mxu0 %v1920_v5  ;;  %v291_v19 = vpack.c.bf16 %v276_v18, %v275_v17  ;;  %v292_v22 = vpack.c.bf16 %v278_v21, %v277_v20  ;;  %v279_v23 = vld [vmem:[%s2413_s15 + $0x20] sm:$0xff]  ;;  %v280_v24 = vld [vmem:[%s2413_s15 + $0x28] sm:$0xff]  ;;  %v281_v26 = vld [vmem:[%s2413_s15 + $0x30] sm:$0xff]  ;;  %s1630_s10 = sshll.u32 %s3427_s14, 4  ;;  %s3463_s13 = scalar_lea.hbm %s3515_s5, %s1774_s16  ;;  %s3465_s10 = int_to_ptr.vmem [resolvable:$true] %s1630_s10 }
  0x5f   : > { %v293_v25 = vpack.c.bf16 %v280_v24, %v279_v23  ;;  %v282_v27 = vld [vmem:[%s2413_s15 + $0x38] sm:$0xff]  ;;  %v283_v29 = vld [vmem:[%s2413_s15 + $0x40] sm:$0xff]  ;;  %v284_v30 = vld [vmem:[%s2413_s15 + $0x48] sm:$0xff]  ;;  %v319_v54 = vsub.s32 0, %v318_v52  ;;  %v323_v1 = vsub.s32 1, %v318_v52  ;;  %s1617_s27 = scalar_lea.sflag [#allocation4], %s2407_s6 }
  0x60   : > { %v294_v28 = vpack.c.bf16 %v282_v27, %v281_v26  ;;  %v295_v31 = vpack.c.bf16 %v284_v30, %v283_v29  ;;  %v285_v32 = vld [vmem:[%s2413_s15 + $0x50] sm:$0xff]  ;;  %v286_v33 = vld [vmem:[%s2413_s15 + $0x58] sm:$0xff]  ;;  %v287_v35 = vld [vmem:[%s2413_s15 + $0x60] sm:$0xff]  ;;  %s2162_s23 = scalar_lea.vmem %s3465_s10, 2048  ;;  %p3658_p2 = scmp.ne.s32.totalorder %s3555_s30, 0 }
  0x61   : > { %412 = vmatpush1.bf16.msra.mxu0 %v1922_v6  ;;  %v296_v34 = vpack.c.bf16 %v286_v33, %v285_v32  ;;  %v288_v36 = vld [vmem:[%s2413_s15 + $0x68] sm:$0xff]  ;;  %v289_v38 = vld [vmem:[%s2413_s15 + $0x70] sm:$0xff]  ;;  %v290_v39 = vld [vmem:[%s2413_s15 + $0x78] sm:$0xff]  ;;  %p2163_p10 = scmp.ne.s32.totalorder %s3465_s10, %s2162_s23  ;;  %s2241_s22 = smov [#allocation8]  }
  0x62   : > { %413 = vmatprep.subr.bf16.mxu0 %v1923_v7  ;;  %v297_v37 = vpack.c.bf16 %v288_v36, %v287_v35  ;;  %v298_v40 = vpack.c.bf16 %v290_v39, %v289_v38  ;;  %v1938_v41 = vld [vmem:[#allocation7 + $0x78] sm:$0xff]   ;;  %v1940_v43 = vld [vmem:[#allocation7 + $0x70] sm:$0xff]   ;;  %v1942_v45 = vld [vmem:[#allocation7 + $0x68] sm:$0xff]   ;;  %s2166_s8 = sshll.u32 %s2241_s22, 4  ;;  %s2167_s8 = int_to_ptr.vmem [resolvable:$false] %s2166_s8 }
  0x63   : > { %v1939_v42 = vld [vmem:[#allocation7 + $0x38] sm:$0xff]   ;;  %1775 = vmatprep.subr.bf16.mxu1 %v1938_v41  ;;  %v1941_v44 = vld [vmem:[#allocation7 + $0x30] sm:$0xff]   ;;  %v1943_v46 = vld [vmem:[#allocation7 + $0x28] sm:$0xff]   ;;  %p2164_p7 = pnand %p2163_p10, %p3658_p2  ;;  %s2168_s7 = scalar_lea.vmem %s2167_s8, 4096 }
  0x64   : > { %1776 = vmatpush3.bf16.msra.mxu1 %v1939_v42  ;;  %v1944_v47 = vld [vmem:[#allocation7 + $0x60] sm:$0xff]   ;;  %v1946_v49 = vld [vmem:[#allocation7 + $0x58] sm:$0xff]   ;;  %v1948_v57 = vld [vmem:[#allocation7 + $0x50] sm:$0xff]   ;;  %p2169_p13 = scmp.lt.s32.totalorder %s3465_s10, %s2167_s8  ;;  %p2170_p0 = scmp.lt.s32.totalorder %s2168_s7, %s2162_s23 }
  0x65   : > { %414 = vmatpush1.bf16.msra.mxu0 %v1925_v8  ;;  %1777 = vmatprep.subr.bf16.mxu1 %v1940_v43  ;;  %v1945_v48 = vld [vmem:[#allocation7 + $0x20] sm:$0xff]   ;;  %v1947_v51 = vld [vmem:[#allocation7 + $0x18] sm:$0xff]   ;;  %v1949_v58 = vld [vmem:[#allocation7 + $0x10] sm:$0xff]   ;;  %p2165_p12 = pneg %p2164_p7 }
  0x66   : > { %415 = vmatprep.subr.bf16.mxu0 %v1926_v9  ;;  %v315_v56 = vld [vmem:[%s3512_s2] sm:$0x3]  ;;  %v1950_v2 = vld [vmem:[#allocation7 + $0x48] sm:$0xff]   ;;  %p2171_p5 = por %p2170_p0, %p2169_p13 }
  0x67   : > { %v2450_v59 = vrot.slane %v315_v56, %v319_v54  ;;  %v1951_v6 = vld [vmem:[#allocation7 + $0x8] sm:$0xff]   ;;  %v2462_v7 = vrot.slane %v315_v56, %v323_v1  ;;  %v1952_v29 = vld [vmem:[#allocation7 + $0x40] sm:$0xff]  }
  0x68   : > { %1778 = vmatpush3.bf16.msra.mxu1 %v1941_v44  ;;  %v1953_v32 = vld [vmem:[#allocation7] sm:$0xff]   ;;  %p2172_p3 = pnand %p2171_p5, %p2165_p12 }
  0x69   : > { %416 = vmatpush1.bf16.msra.mxu0 %v1928_v10  ;;  %1779 = vmatprep.subr.bf16.mxu1 %v1942_v45 }
  0x6a   : > { %417 = vmatprep.subr.bf16.mxu0 %v1929_v11 }
  0x6c   : > { %1780 = vmatpush3.bf16.msra.mxu1 %v1943_v46 }
  0x6d   : > { %418 = vmatpush1.bf16.msra.mxu0 %v1931_v12  ;;  %1781 = vmatprep.subr.bf16.mxu1 %v1944_v47 }
  0x6e   : > { %419 = vmatprep.subr.bf16.mxu0 %v1932_v13 }
  0x70   : > { %1782 = vmatpush3.bf16.msra.mxu1 %v1945_v48 }
  0x71   : > { %420 = vmatpush1.bf16.msra.mxu0 %v1934_v14  ;;  %1783 = vmatprep.subr.bf16.mxu1 %v1946_v49 }
  0x72   : > { %421 = vmatprep.subr.bf16.mxu0 %v1935_v15 }
  0x74   : > { %1784 = vmatpush3.bf16.msra.mxu1 %v1947_v51 }
  0x75   : > { %422 = vmatpush1.bf16.msra.mxu0 %v1937_v16  ;;  %1785 = vmatprep.subr.bf16.mxu1 %v1948_v57 }
  0x78   : > { %440 = vmatmul.mubr.bf16.vlgmr.msra.gmra.mxu0 %v291_v19  ;;  %1786 = vmatpush3.bf16.msra.mxu1 %v1949_v58 }
  0x79   : > { %449 = vmatprep.mubr.bf16.mxu0 %v2239_v0  ;;  %1787 = vmatprep.subr.bf16.mxu1 %v1950_v2  ;;  %v3521_v2 = vmov -1.0  }
  0x7c   : > { %1788 = vmatpush3.bf16.msra.mxu1 %v1951_v6 }
  0x7d   : > { %1789 = vmatprep.subr.bf16.mxu1 %v1952_v29 }
  0x80   : > { %450 = vmatmul.mubr.bf16.gmra.mxu0 %v292_v22  ;;  %1790 = vmatpush3.bf16.msra.mxu1 %v1953_v32 }
  0x81   : > { %459 = vmatprep.mubr.bf16.mxu0 %v2239_v0 }
  0x88   : > { %460 = vmatmul.mubr.bf16.gmra.mxu0 %v293_v25 }
  0x89   : > { %469 = vmatprep.mubr.bf16.mxu0 %v2239_v0 }
  0x90   : > { %470 = vmatmul.mubr.bf16.gmra.mxu0 %v294_v28 }
  0x91   : > { %479 = vmatprep.mubr.bf16.mxu0 %v2239_v0 }
  0x98   : > { %480 = vmatmul.mubr.bf16.gmra.mxu0 %v295_v31 }
  0x99   : > { %489 = vmatprep.mubr.bf16.mxu0 %v2239_v0 }
  0xa0   : > { %490 = vmatmul.mubr.bf16.gmra.mxu0 %v296_v34 }
  0xa1   : > { %499 = vmatprep.mubr.bf16.mxu0 %v2239_v0 }
  0xa8   : > { %500 = vmatmul.mubr.bf16.gmra.mxu0 %v297_v37 }
  0xa9   : > { %509 = vmatprep.mubr.bf16.mxu0 %v2239_v0 }
  0xb0   : > { %510 = vmatmul.mubr.bf16.gmra.mxu0 %v298_v40 }
 0x138   : > { %v441_v53 = vpop.f32.mrf.mxu0 }
 0x139   : > { %v2453_v61 = vadd.f32 %v441_v53, %v2450_v59 }
 0x13a   : > { %v443_v55 = vpop.f32.mrf.mxu0 }
 0x13b   : > { %v2456_v63 = vmul.f32 0.70710677, %v2453_v61  ;;  %v444_v23 = vadd.f32 %v443_v55, %v2462_v7  ;;  %v2542_v58 = vmul.f32 0.5, %v2453_v61 }
 0x13c   : > { %v445_v60 = vpop.f32.mrf.mxu0 }
 0x13d   : > { %v648_v3 = vand.u32 2147483647, %v2456_v63  ;;  %v2460_v4 = vadd.f32 %v445_v60, %v2450_v59  ;;  %v553_v33 = vmul.f32 0.70710677, %v444_v23  ;;  %vm584_vm0 = vcmp.ge.f32.partialorder %v2456_v63, 0.0 }
 0x13e   : > { %v447_v62 = vpop.f32.mrf.mxu0 }
 0x13f   : > { %v680_v9 = vmul.f32 0.3275911, %v648_v3  ;;  %v2468_v10 = vmul.f32 0.70710677, %v2460_v4  ;;  %v649_v40 = vand.u32 2147483647, %v553_v33  ;;  %v448_v41 = vadd.f32 %v447_v62, %v2462_v7 }
 0x140   : > { %v451_v0 = vpop.f32.mrf.mxu0  ;;  %v1064_v44 = vsub.f32 0.0, %v648_v3  ;;  %vm585_vm1 = vcmp.ge.f32.partialorder %v553_v33, 0.0 }
 0x141   : > { %v2465_v8 = vadd.f32 %v451_v0, %v2450_v59  ;;  %v712_v14 = vadd.f32 1.0, %v680_v9  ;;  %v2477_v15 = vand.u32 2147483647, %v2468_v10  ;;  %v1065_v49 = vsub.f32 0.0, %v649_v40 }
 0x142   : > { %v453_v5 = vpop.f32.mrf.mxu0  ;;  %v2529_v50 = vmul.f32 0.70710677, %v448_v41  ;;  %v1096_v55 = vmul.f32 %v1064_v44, %v648_v3  ;;  %v681_v60 = vmul.f32 0.3275911, %v649_v40  ;;  %v2549_v3 = vmul.f32 0.5, %v444_v23 }
 0x143   : > { %v2471_v12 = vadd.f32 %v453_v5, %v2462_v7  ;;  %v2474_v13 = vmul.f32 0.70710677, %v2465_v8  ;;  %1954 = vrcp.f32 %v712_v14  ;;  %v682_v19 = vmul.f32 0.3275911, %v2477_v15 }
 0x144   : > { %v455_v11 = vpop.f32.mrf.mxu0  ;;  %3562 = vst [vmem:[#allocation12_spill] sm:$0xff] %v2529_v50  ;;  %v1097_v62 = vmul.f32 %v1065_v49, %v649_v40  ;;  %v1066_v63 = vsub.f32 0.0, %v2477_v15  ;;  %v651_v0 = vand.u32 2147483647, %v2529_v50  ;;  %v2547_v5 = vsel %vm584_vm0, 1.0, %v3521_v2  ;;  %3563 = vst [vmem:[#allocation13_spill] sm:$0xff] %v2549_v3 }
 0x145   : > { %v2480_v17 = vmul.f32 0.70710677, %v2471_v12  ;;  %v2483_v18 = vand.u32 2147483647, %v2474_v13  ;;  %v2487_v20 = vadd.f32 %v455_v11, %v2450_v59  ;;  %v714_v27 = vadd.f32 1.0, %v682_v19 }
 0x146   : > { %v457_v16 = vpop.f32.mrf.mxu0  ;;  %v1128_v11 = vmul.f32 1.442695, %v1096_v55  ;;  %v713_v19 = vadd.f32 1.0, %v681_v60  ;;  %vm586_vm2 = vcmp.ge.f32.partialorder %v2468_v10, 0.0  ;;  %v2563_v23 = vsel %vm585_vm1, 1.0, %v3521_v2 }
 0x147   : > { %v2490_v22 = vand.u32 2147483647, %v2480_v17  ;;  %v2494_v24 = vadd.f32 %v457_v16, %v2462_v7  ;;  %v684_v25 = vmul.f32 0.3275911, %v2483_v18  ;;  %v2501_v28 = vmul.f32 0.70710677, %v2487_v20 }
 0x148   : > { %v461_v21 = vpop.f32.mrf.mxu0  ;;  %1956 = vrcp.f32 %v714_v27  ;;  %3564 = vst [vmem:[#allocation14_spill] sm:$0xff] %v2563_v23  ;;  %v1098_v27 = vmul.f32 %v1066_v63, %v2477_v15  ;;  %v683_v29 = vmul.f32 0.3275911, %v651_v0  ;;  %v1067_v32 = vsub.f32 0.0, %v651_v0 }
 0x149   : > { %v2498_v26 = vadd.f32 %v461_v21, %v2450_v59  ;;  %v685_v30 = vmul.f32 0.3275911, %v2490_v22  ;;  %v2505_v34 = vmul.f32 0.70710677, %v2494_v24  ;;  %v716_v35 = vadd.f32 1.0, %v684_v25 }
 0x14a   : > { %v463_v31 = vpop.f32.mrf.mxu0  ;;  %v2511_v37 = vand.u32 2147483647, %v2501_v28  ;;  %v2558_v21 = vmul.f32 0.5, %v2460_v4  ;;  %v1130_v25 = vmul.f32 1.442695, %v1097_v62  ;;  %v2578_v15 = vsel %vm586_vm2, 1.0, %v3521_v2 }
 0x14b   : > { %v2508_v36 = vmul.f32 0.70710677, %v2498_v26  ;;  %v2514_v38 = vadd.f32 %v463_v31, %v2462_v7  ;;  %v717_v39 = vadd.f32 1.0, %v685_v30  ;;  %v2518_v42 = vand.u32 2147483647, %v2505_v34 }
 0x14c   : > { %1958 = vrcp.f32 %v716_v35  ;;  %v686_v45 = vmul.f32 0.3275911, %v2511_v37  ;;  %v465_v47 = vpop.f32.mrf.mxu0  ;;  %v2566_v31 = vmul.f32 0.5, %v448_v41  ;;  %v1068_v41 = vsub.f32 0.0, %v2483_v18 }
 0x14d   : > { %v2521_v43 = vand.u32 2147483647, %v2508_v36  ;;  %v2525_v46 = vmul.f32 0.70710677, %v2514_v38  ;;  %1960 = vrcp.f32 %v717_v39  ;;  %v687_v51 = vmul.f32 0.3275911, %v2518_v42 }
 0x14e   : > { %v2535_v53 = vadd.f32 %v465_v47, %v2450_v59  ;;  %v718_v56 = vadd.f32 1.0, %v686_v45  ;;  %v467_v30 = vpop.f32.mrf.mxu0  ;;  %3565 = vst [vmem:[#allocation15_spill] sm:$0xff] %v2566_v31  ;;  %v1132_v47 = vmul.f32 1.442695, %v1098_v27  ;;  %v715_v49 = vadd.f32 1.0, %v683_v29 }
 0x14f   : > { %v688_v52 = vmul.f32 0.3275911, %v2521_v43  ;;  %v2539_v57 = vand.u32 2147483647, %v2525_v46  ;;  %v719_v1 = vadd.f32 1.0, %v687_v51  ;;  %v2582_v44 = vadd.f32 %v467_v30, %v2462_v7 }
 0x150   : > { %v2527_v48 = vpop.eup %1954  ;;  %v2552_v9 = vmul.f32 0.70710677, %v2535_v53  ;;  %1962 = vrcp.f32 %v718_v56  ;;  %v1069_v51 = vsub.f32 0.0, %v2490_v22  ;;  %vm588_vm3 = vcmp.ge.f32.partialorder %v2474_v13, 0.0 }
 0x151   : > { %v776_v54 = vmul.f32 1.0614054, %v2527_v48  ;;  %v720_v6 = vadd.f32 1.0, %v688_v52  ;;  %v689_v14 = vmul.f32 0.3275911, %v2539_v57  ;;  %1964 = vrcp.f32 %v719_v1 }
 0x152   : > { %v2569_v35 = vand.u32 2147483647, %v2552_v9  ;;  %v1099_v52 = vmul.f32 %v1067_v32, %v651_v0  ;;  %vm589_vm4 = vcmp.ge.f32.partialorder %v2480_v17, 0.0  ;;  %v1100_v60 = vmul.f32 %v1068_v41, %v2483_v18 }
 0x153   : > { %v808_v61 = vadd.f32 -1.4531521, %v776_v54  ;;  %1966 = vrcp.f32 %v720_v6  ;;  %v721_v40 = vadd.f32 1.0, %v689_v14  ;;  %v1070_v63 = vsub.f32 0.0, %v2511_v37 }
 0x154   : > { %1968 = vpow2.f32 %v1128_v11  ;;  %v690_v10 = vmul.f32 0.3275911, %v2569_v35  ;;  %v2595_v1 = vmul.f32 0.70710677, %v2582_v44  ;;  %v2598_v0 = vmul.f32 0.5, %v2465_v8 }
 0x155   : > { %v2555_v16 = vpop.eup %1956  ;;  %v840_v39 = vmul.f32 %v2527_v48, %v808_v61  ;;  %1970 = vrcp.f32 %v713_v19  ;;  %v2601_v6 = vmul.f32 0.5, %v2471_v12  ;;  %v1101_v61 = vmul.f32 %v1069_v51, %v2490_v22 }
 0x156   : > { %v778_v33 = vmul.f32 1.0614054, %v2555_v16  ;;  %1972 = vpow2.f32 %v1130_v25  ;;  %v1134_v11 = vmul.f32 1.442695, %v1099_v52  ;;  %v722_v18 = vadd.f32 1.0, %v690_v10 }
 0x157   : > { %v872_v55 = vadd.f32 1.4214138, %v840_v39  ;;  %1974 = vrcp.f32 %v721_v40  ;;  %v2609_v27 = vsel %vm588_vm3, 1.0, %v3521_v2  ;;  %v2614_v8 = vsel %vm589_vm4, 1.0, %v3521_v2 }
 0x158   : > { %v810_v56 = vadd.f32 -1.4531521, %v778_v33  ;;  %1976 = vpow2.f32 %v1132_v47  ;;  %v1136_v22 = vmul.f32 1.442695, %v1100_v60  ;;  %v1102_v30 = vmul.f32 %v1070_v63, %v2511_v37 }
 0x159   : > { %v2571_v4 = vpop.eup %1958  ;;  %1978 = vrcp.f32 %v715_v49  ;;  %v904_v19 = vmul.f32 %v2527_v48, %v872_v55  ;;  %v2620_v32 = vand.u32 2147483647, %v2595_v1  ;;  %v1138_v39 = vmul.f32 1.442695, %v1101_v61 }
 0x15a   : > { %v2584_v45 = vpop.eup %1960  ;;  %v780_v54 = vmul.f32 1.0614054, %v2571_v4  ;;  %v842_v25 = vmul.f32 %v2555_v16, %v810_v56  ;;  %v2623_v33 = vmul.f32 0.5, %v2487_v20  ;;  %v2626_v13 = vmul.f32 0.5, %v2494_v24  ;;  %v471_v24 = vpop.f32.mrf.mxu0 }
 0x15b   : > { %v781_v62 = vmul.f32 1.0614054, %v2584_v45  ;;  %v1071_v17 = vsub.f32 0.0, %v2518_v42  ;;  %vm590_vm5 = vcmp.ge.f32.partialorder %v2501_v28, 0.0  ;;  %vm591_vm6 = vcmp.ge.f32.partialorder %v2505_v34, 0.0 }
 0x15c   : > { %v812_v14 = vadd.f32 -1.4531521, %v780_v54  ;;  %3566 = vst [vmem:[#allocation16_spill] sm:$0xff] %v2623_v33  ;;  %3567 = vst [vmem:[#allocation17_spill] sm:$0xff] %v2626_v13  ;;  %1980 = vrcp.f32 %v722_v18  ;;  %v936_v47 = vadd.f32 -0.28449672, %v904_v19 }
 0x15d   : > { %v2616_v12 = vpop.eup %1962  ;;  %v813_v29 = vadd.f32 -1.4531521, %v781_v62  ;;  %v874_v49 = vadd.f32 1.4214138, %v842_v25  ;;  %1982 = vpow2.f32 %v1134_v11  ;;  %v1140_v54 = vmul.f32 1.442695, %v1102_v30 }
 0x15e   : > { %v2629_v40 = vpop.eup %1964  ;;  %v844_v41 = vmul.f32 %v2571_v4, %v812_v14  ;;  %v782_v20 = vmul.f32 1.0614054, %v2616_v12  ;;  %1984 = vpow2.f32 %v1136_v22  ;;  %v691_v10 = vmul.f32 0.3275911, %v2620_v32 }
 0x15f   : > { %v845_v52 = vmul.f32 %v2584_v45, %v813_v29  ;;  %1986 = vpow2.f32 %v1138_v39  ;;  %v2646_v56 = vsel %vm590_vm5, 1.0, %v3521_v2  ;;  %v783_v60 = vmul.f32 1.0614054, %v2629_v40 }
 0x160   : > { %v2634_v37 = vpop.eup %1966  ;;  %v1103_v62 = vmul.f32 %v1071_v17, %v2518_v42  ;;  %v876_v61 = vadd.f32 1.4214138, %v844_v41  ;;  %v2655_v11 = vsel %vm591_vm6, 1.0, %v3521_v2  ;;  %vm592_vm7 = vcmp.ge.f32.partialorder %v2508_v36, 0.0  ;;  %v473_v42 = vpop.f32.mrf.mxu0 }
 0x161   : > { %v2637_v51 = vpop.eup %1968  ;;  %v784_v14 = vmul.f32 1.0614054, %v2634_v37  ;;  %v968_v28 = vmul.f32 %v2527_v48, %v936_v47  ;;  %v906_v18 = vmul.f32 %v2555_v16, %v874_v49  ;;  %v814_v19 = vadd.f32 -1.4531521, %v782_v20 }
 0x162   : > { %v2641_v55 = vpop.eup %1970  ;;  %v2662_v25 = vmul.f32 0.5, %v2498_v26  ;;  %v877_v29 = vadd.f32 1.4214138, %v845_v52  ;;  %1988 = vpow2.f32 %v1140_v54  ;;  %v1072_v34 = vsub.f32 0.0, %v2521_v43 }
 0x163   : > { %3568 = vst [vmem:[#allocation18_spill] sm:$0xff] %v2641_v55  ;;  %v2650_v63 = vpop.eup %1972  ;;  %v723_v30 = vadd.f32 1.0, %v691_v10  ;;  %v815_v39 = vadd.f32 -1.4531521, %v783_v60  ;;  %v1142_v36 = vmul.f32 1.442695, %v1103_v62  ;;  %v2671_v41 = vadd.f32 %v471_v24, %v2450_v59 }
 0x164   : > { %3569 = vst [vmem:[#allocation19_spill] sm:$0xff] %v2650_v63  ;;  %3570 = vst [vmem:[#allocation20_spill] sm:$0xff] %v2662_v25  ;;  %v2664_v22 = vpop.eup %1974  ;;  %v2668_v17 = vsel %vm592_vm7, 1.0, %v3521_v2  ;;  %v908_v26 = vmul.f32 %v2571_v4, %v876_v61  ;;  %v816_v49 = vadd.f32 -1.4531521, %v784_v14  ;;  %v2677_v20 = vmul.f32 0.5, %v2514_v38 }
 0x165   : > { %v2673_v47 = vpop.eup %1976  ;;  %v2680_v52 = vadd.f32 %v473_v42, %v2462_v7  ;;  %v1000_v10 = vadd.f32 0.2548296, %v968_v28  ;;  %v938_v60 = vadd.f32 -0.28449672, %v906_v18  ;;  %v846_v62 = vmul.f32 %v2616_v12, %v814_v19  ;;  %v475_v18 = vpop.f32.mrf.mxu0 }
 0x166   : > { %3571 = vst [vmem:[#allocation21_spill] sm:$0xff] %v2677_v20  ;;  %v2682_v54 = vpop.eup %1978  ;;  %v785_v24 = vmul.f32 1.0614054, %v2664_v22  ;;  %v909_v2 = vmul.f32 %v2584_v45, %v877_v29  ;;  %v1104_v31 = vmul.f32 %v1072_v34, %v2521_v43  ;;  %v1073_v61 = vsub.f32 0.0, %v2539_v57 }
 0x167   : > { %3572 = vst [vmem:[#allocation22_spill] sm:$0xff] %v2682_v54  ;;  %1990 = vrcp.f32 %v723_v30  ;;  %v847_v38 = vmul.f32 %v2629_v40, %v815_v39  ;;  %v2691_v14 = vmul.f32 0.5, %v2535_v53  ;;  %v2694_v28 = vmul.f32 0.70710677, %v2671_v41 }
 0x168   : > { %1992 = vpow2.f32 %v1142_v36  ;;  %v940_v19 = vadd.f32 -0.28449672, %v908_v26  ;;  %v848_v42 = vmul.f32 %v2634_v37, %v816_v49  ;;  %vm593_vm8 = vcmp.ge.f32.partialorder %v2525_v46, 0.0 }
 0x169   : > { %3573 = vst [vmem:[#allocation23_spill] sm:$0xff] %v2691_v14  ;;  %v2699_v43 = vmul.f32 0.70710677, %v2680_v52  ;;  %v2701_v29 = vpop.eup %1980  ;;  %v1032_v34 = vmul.f32 %v2527_v48, %v1000_v10  ;;  %v970_v30 = vmul.f32 %v2555_v16, %v938_v60  ;;  %v878_v53 = vadd.f32 1.4214138, %v846_v62  ;;  %v477_v10 = vpop.f32.mrf.mxu0 }
 0x16a   : > { %v817_v39 = vadd.f32 -1.4531521, %v785_v24  ;;  %v2705_v36 = vpop.eup %1982  ;;  %v941_v3 = vadd.f32 -0.28449672, %v909_v2  ;;  %v1144_v23 = vmul.f32 1.442695, %v1104_v31  ;;  %v1105_v26 = vmul.f32 %v1073_v61, %v2539_v57 }
 0x16b   : > { %3574 = vst [vmem:[#allocation24_spill] sm:$0xff] %v2705_v36  ;;  %v2709_v49 = vadd.f32 %v475_v18, %v2450_v59  ;;  %v1985_v46 = vpop.eup %1984  ;;  %v879_v63 = vadd.f32 1.4214138, %v847_v38  ;;  %v3576_v50 = vmov -1.0   ;;  %vm594_vm9 = vcmp.ge.f32.partialorder %v2552_v9, 0.0 }
 0x16c   : > { %v2712_v54 = vsel %vm593_vm8, 1.0, %v3576_v50  ;;  %v2716_v48 = vand.u32 2147483647, %v2694_v28  ;;  %v1987_v60 = vpop.eup %1986  ;;  %v972_v2 = vmul.f32 %v2571_v4, %v940_v19  ;;  %v880_v31 = vadd.f32 1.4214138, %v848_v42 }
 0x16d   : > { %3575 = vst [vmem:[#allocation25_spill] sm:$0xff] %v2709_v49  ;;  %v786_v57 = vmul.f32 1.0614054, %v2701_v29  ;;  %v2721_v62 = vand.u32 2147483647, %v2699_v43  ;;  %v1192_v24 = vmul.f32 %v2637_v51, %v1032_v34  ;;  %v910_v38 = vmul.f32 %v2616_v12, %v878_v53 }
 0x16e   : > { %v1002_v61 = vadd.f32 0.2548296, %v970_v30  ;;  %v849_v18 = vmul.f32 %v2664_v22, %v817_v39  ;;  %v973_v36 = vmul.f32 %v2584_v45, %v941_v3  ;;  %1994 = vpow2.f32 %v1144_v23  ;;  %v481_v3 = vpop.f32.mrf.mxu0 }
 0x16f   : > { %v1146_v55 = vmul.f32 1.442695, %v1105_v26  ;;  %v2728_v14 = vmul.f32 0.70710677, %v2709_v49  ;;  %v2730_v19 = vpop.eup %1988  ;;  %v911_v42 = vmul.f32 %v2629_v40, %v879_v63  ;;  %v2736_v51 = vsel %vm594_vm9, 1.0, %v3576_v50 }
 0x170   : > { %3578 = vst [vmem:[#allocation27_spill] sm:$0xff] %v2736_v51  ;;  %v692_v34 = vmul.f32 0.3275911, %v2716_v48  ;;  %v2740_v30 = vadd.f32 %v477_v10, %v2462_v7  ;;  %v1004_v23 = vadd.f32 0.2548296, %v972_v2  ;;  %v912_v53 = vmul.f32 %v2634_v37, %v880_v31 }
 0x171   : > { %3577 = vst [vmem:[#allocation26_spill] sm:$0xff] %v2728_v14  ;;  %v818_v39 = vadd.f32 -1.4531521, %v786_v57  ;;  %v693_v26 = vmul.f32 0.3275911, %v2721_v62  ;;  %v1224_v20 = vsub.f32 1.0, %v1192_v24  ;;  %v1034_v63 = vmul.f32 %v2555_v16, %v1002_v61 }
 0x172   : > { %3579 = vst [vmem:[#allocation28_spill] sm:$0xff] %v2740_v30  ;;  %v942_v25 = vadd.f32 -0.28449672, %v910_v38  ;;  %v881_v49 = vadd.f32 1.4214138, %v849_v18  ;;  %v2746_v51 = vmul.f32 0.5, %v2582_v44  ;;  %v2752_v10 = vadd.f32 %v481_v3, %v2450_v59 }
 0x173   : > { %v1005_v9 = vadd.f32 0.2548296, %v973_v36  ;;  %v2749_v13 = vand.u32 2147483647, %v2728_v14  ;;  %v943_v31 = vadd.f32 -0.28449672, %v911_v42  ;;  %v1036_v44 = vmul.f32 %v2571_v4, %v1004_v23  ;;  %v483_v23 = vpop.f32.mrf.mxu0 }
 0x174   : > { %3580 = vst [vmem:[#allocation29_spill] sm:$0xff] %v2746_v51  ;;  %3581 = vst [vmem:[#allocation30_spill] sm:$0xff] %v2752_v10  ;;  %v2754_v2 = vpop.eup %1990  ;;  %v1074_v57 = vsub.f32 0.0, %v2569_v35  ;;  %v724_v24 = vadd.f32 1.0, %v692_v34  ;;  %v2758_v16 = vmul.f32 0.70710677, %v2740_v30  ;;  %v850_v38 = vmul.f32 %v2701_v29, %v818_v39 }
 0x175   : > { %v2760_v61 = vpop.eup %1992  ;;  %v944_v36 = vadd.f32 -0.28449672, %v912_v53  ;;  %v725_v18 = vadd.f32 1.0, %v693_v26  ;;  %v1256_v3 = vmul.f32 %v1224_v20, %v2547_v5  ;;  %v1194_v51 = vmul.f32 %v2673_v47, %v1034_v63 }
 0x176   : > { %v974_v42 = vmul.f32 %v2616_v12, %v942_v25  ;;  %v913_v14 = vmul.f32 %v2664_v22, %v881_v49  ;;  %v1037_v34 = vmul.f32 %v2584_v45, %v1005_v9  ;;  %v787_v30 = vmul.f32 1.0614054, %v2754_v2 }
 0x177   : > { %v694_v33 = vmul.f32 0.3275911, %v2749_v13  ;;  %v2772_v4 = vmul.f32 0.70710677, %v2752_v10  ;;  %v975_v53 = vmul.f32 %v2629_v40, %v943_v31  ;;  %v1106_v5 = vmul.f32 %v1074_v57, %v2569_v35 }
 0x178   : > { %1996 = vrcp.f32 %v724_v24  ;;  %v2777_v47 = vand.u32 2147483647, %v2758_v16  ;;  %v1196_v25 = vmul.f32 %v1985_v46, %v1036_v44  ;;  %v976_v20 = vmul.f32 %v2634_v37, %v944_v36 }
 0x179   : > { %v882_v45 = vadd.f32 1.4214138, %v850_v38  ;;  %1998 = vrcp.f32 %v725_v18  ;;  %v1226_v49 = vsub.f32 1.0, %v1194_v51  ;;  %v1006_v39 = vadd.f32 0.2548296, %v974_v42 }
 0x17a   : > { %v945_v26 = vadd.f32 -0.28449672, %v913_v14  ;;  %v2781_v63 = vadd.f32 %v483_v23, %v2462_v7  ;;  %v1197_v9 = vmul.f32 %v1987_v60, %v1037_v34  ;;  %v819_v10 = vadd.f32 -1.4531521, %v787_v30 }
 0x17b   : > { %v726_v31 = vadd.f32 1.0, %v694_v33  ;;  %v2784_v35 = vand.u32 2147483647, %v2772_v4  ;;  %v1995_v57 = vpop.eup %1994  ;;  %v1007_v24 = vadd.f32 0.2548296, %v975_v53  ;;  %2000 = vpow2.f32 %v1146_v55 }
 0x17c   : > { %v1148_v46 = vmul.f32 1.442695, %v1106_v5  ;;  %v695_v44 = vmul.f32 0.3275911, %v2777_v47  ;;  %v1288_v36 = vadd.f32 1.0, %v1256_v3  ;;  %v1228_v38 = vsub.f32 1.0, %v1196_v25  ;;  %v485_v3 = vpop.f32.mrf.mxu0 }
 0x17d   : > { %v1008_v51 = vadd.f32 0.2548296, %v976_v20  ;;  %v914_v14 = vmul.f32 %v2701_v29, %v882_v45  ;;  %v1038_v18 = vmul.f32 %v2616_v12, %v1006_v39  ;;  %v977_v60 = vmul.f32 %v2664_v22, %v945_v26 }
 0x17e   : > { %v1075_v33 = vsub.f32 0.0, %v2620_v32  ;;  %v2792_v30 = vmul.f32 0.70710677, %v2781_v63  ;;  %v1229_v42 = vsub.f32 1.0, %v1197_v9  ;;  %v851_v55 = vmul.f32 %v2754_v2, %v819_v10 }
 0x17f   : > { %2002 = vrcp.f32 %v726_v31  ;;  %v696_v34 = vmul.f32 0.3275911, %v2784_v35  ;;  %v1258_v23 = vmul.f32 %v1226_v49, %v2578_v15  ;;  %v1039_v53 = vmul.f32 %v2629_v40, %v1007_v24 }
 0x180   : > { %2004 = vpow2.f32 %v1148_v46  ;;  %v727_v12 = vadd.f32 1.0, %v695_v44  ;;  %v1260_v5 = vmul.f32 %v1228_v38, %v2609_v27  ;;  %v1040_v25 = vmul.f32 %v2634_v37, %v1008_v51 }
 0x181   : > { %v946_v20 = vadd.f32 -0.28449672, %v914_v14  ;;  %vm595_vm10 = vcmp.ge.f32.partialorder %v2595_v1, 0.0  ;;  %v1198_v45 = vmul.f32 %v2730_v19, %v1038_v18  ;;  %v1009_v10 = vadd.f32 0.2548296, %v977_v60 }
 0x182   : > { %v2803_v39 = vand.u32 2147483647, %v2792_v30  ;;  %v2806_v26 = vadd.f32 %v485_v3, %v2450_v59  ;;  %v1261_v15 = vmul.f32 %v1229_v42, %v2614_v8  ;;  %v883_v40 = vadd.f32 1.4214138, %v851_v55 }
 0x183   : > { %v1107_v49 = vmul.f32 %v1075_v33, %v2620_v32  ;;  %v728_v27 = vadd.f32 1.0, %v696_v34  ;;  %v2811_v37 = vmul.f32 %v1288_v36, %v2542_v58  ;;  %v1290_v9 = vadd.f32 1.0, %v1258_v23 }
 0x184   : > { %v1199_v31 = vmul.f32 %v2760_v61, %v1039_v53  ;;  %2006 = vrcp.f32 %v727_v12  ;;  %v1292_v24 = vadd.f32 1.0, %v1260_v5  ;;  %v1200_v46 = vmul.f32 %v1995_v57, %v1040_v25 }
 0x185   : > { %v2814_v19 = vpop.eup %1996  ;;  %v978_v44 = vmul.f32 %v2701_v29, %v946_v20  ;;  %v2820_v8 = vsel %vm595_vm10, 1.0, %v3576_v50  ;;  %v1230_v38 = vsub.f32 1.0, %v1198_v45  ;;  %v1041_v58 = vmul.f32 %v2664_v22, %v1009_v10  ;;  %v487_v22 = vpop.f32.mrf.mxu0 }
 0x186   : > { %v2822_v32 = vpop.eup %1998  ;;  %v697_v36 = vmul.f32 0.3275911, %v2803_v39  ;;  %v2827_v61 = vmul.f32 0.70710677, %v2806_v26  ;;  %v1293_v51 = vadd.f32 1.0, %v1261_v15  ;;  %v915_v57 = vmul.f32 %v2754_v2, %v883_v40 }
 0x187   : > { %v1150_v14 = vmul.f32 1.442695, %v1107_v49  ;;  %2008 = vrcp.f32 %v728_v27  ;;  %v2831_v18 = vmul.f32 %v1290_v9, %v2558_v21  ;;  %v1231_v1 = vsub.f32 1.0, %v1199_v31 }
 0x188   : > { %v2834_v60 = vmul.f32 0.5, %v2671_v41  ;;  %v788_v33 = vmul.f32 1.0614054, %v2814_v19  ;;  %v2001_v42 = vpop.eup %2000  ;;  %v2838_v55 = vmul.f32 %v1292_v24, %v2598_v0  ;;  %v1232_v34 = vsub.f32 1.0, %v1200_v46 }
 0x189   : > { %v1010_v3 = vadd.f32 0.2548296, %v978_v44  ;;  %v789_v23 = vmul.f32 1.0614054, %v2822_v32  ;;  %v1262_v53 = vmul.f32 %v1230_v38, %v2646_v56  ;;  %v1201_v12 = vmul.f32 %v2001_v42, %v1041_v58  ;;  %v3583_v42 = vld [vmem:[#allocation16_spill] sm:$0xff] }
 0x18a   : > { %3582 = vst [vmem:[#allocation31_spill] sm:$0xff] %v2838_v55  ;;  %v729_v21 = vadd.f32 1.0, %v697_v36  ;;  %v2843_v5 = vand.u32 2147483647, %v2827_v61  ;;  %v2846_v41 = vmul.f32 %v1293_v51, %v2601_v6  ;;  %v947_v25 = vadd.f32 -0.28449672, %v915_v57 }
 0x18b   : > { %2010 = vpow2.f32 %v1150_v14  ;;  %v2849_v20 = vadd.f32 %v487_v22, %v2462_v7  ;;  %v1263_v45 = vmul.f32 %v1231_v1, %v2655_v11  ;;  %vm596_vm11 = vcmp.ge.f32.partialorder %v2694_v28, 0.0 }
 0x18c   : > { %v2851_v0 = vpop.eup %2002  ;;  %v820_v56 = vadd.f32 -1.4531521, %v788_v33  ;;  %v1076_v10 = vsub.f32 0.0, %v2716_v48  ;;  %v1264_v40 = vmul.f32 %v1232_v34, %v2668_v17  ;;  %v1042_v6 = vmul.f32 %v2701_v29, %v1010_v3 }
 0x18d   : > { %v2005_v15 = vpop.eup %2004  ;;  %vm597_vm12 = vcmp.ge.f32.partialorder %v2699_v43, 0.0  ;;  %v821_v49 = vadd.f32 -1.4531521, %v789_v23  ;;  %v1233_v27 = vsub.f32 1.0, %v1201_v12  ;;  %v1077_v9 = vsub.f32 0.0, %v2721_v62  ;;  %v3585_v43 = vld [vmem:[#allocation17_spill] sm:$0xff] }
 0x18e   : > { %2012 = vrcp.f32 %v729_v21  ;;  %v698_v31 = vmul.f32 0.3275911, %v2843_v5  ;;  %v1294_v11 = vadd.f32 1.0, %v1262_v53  ;;  %v979_v24 = vmul.f32 %v2754_v2, %v947_v25 }
 0x18f   : > { %v790_v46 = vmul.f32 1.0614054, %v2851_v0  ;;  %v2864_v44 = vmul.f32 0.70710677, %v2849_v20  ;;  %v1295_v17 = vadd.f32 1.0, %v1263_v45  ;;  %v852_v29 = vmul.f32 %v2814_v19, %v820_v56  ;;  %v3586_v56 = vld [vmem:[#allocation25_spill] sm:$0xff] }
 0x190   : > { %v1108_v38 = vmul.f32 %v1076_v10, %v2716_v48  ;;  %v2869_v58 = vmul.f32 0.5, %v2680_v52  ;;  %v1202_v51 = vmul.f32 %v2005_v15, %v1042_v6  ;;  %v2876_v57 = vsel %vm596_vm11, 1.0, %v3576_v50 }
 0x191   : > { %v2871_v36 = vpop.eup %2006  ;;  %v2881_v14 = vsel %vm597_vm12, 1.0, %v3576_v50  ;;  %v853_v1 = vmul.f32 %v2822_v32, %v821_v49  ;;  %v1296_v33 = vadd.f32 1.0, %v1264_v40  ;;  %v1265_v48 = vmul.f32 %v1233_v27, %v2712_v54  ;;  %v3587_v49 = vld [vmem:[#allocation26_spill] sm:$0xff] }
 0x192   : > { %v1109_v52 = vmul.f32 %v1077_v9, %v2721_v62  ;;  %v730_v22 = vadd.f32 1.0, %v698_v31  ;;  %v2887_v34 = vmul.f32 %v1294_v11, %v3583_v42  ;;  %v1011_v3 = vadd.f32 0.2548296, %v979_v24  ;;  %v3591_v42 = vld [vmem:[#allocation21_spill] sm:$0xff] }
 0x193   : > { %v822_v28 = vadd.f32 -1.4531521, %v790_v46  ;;  %v2890_v23 = vand.u32 2147483647, %v2864_v44  ;;  %v2895_v12 = vmul.f32 %v1295_v17, %v3585_v43  ;;  %v884_v21 = vadd.f32 1.4214138, %v852_v29 }
 0x194   : > { %3584 = vst [vmem:[#allocation16_spill] sm:$0xff] %v2887_v34  ;;  %v2892_v53 = vpop.eup %2008  ;;  %v1152_v25 = vmul.f32 1.442695, %v1108_v38  ;;  %v791_v54 = vmul.f32 1.0614054, %v2871_v36  ;;  %v1234_v45 = vsub.f32 1.0, %v1202_v51  ;;  %2014 = vrcp.f32 %v730_v22  ;;  %v491_v51 = vpop.f32.mrf.mxu0 }
 0x195   : > { %v885_v62 = vadd.f32 1.4214138, %v853_v1  ;;  %v2899_v10 = vmul.f32 0.5, %v3586_v56  ;;  %v1078_v15 = vsub.f32 0.0, %v2749_v13  ;;  %v1297_v40 = vadd.f32 1.0, %v1265_v48  ;;  %v3588_v46 = vld [vmem:[#allocation20_spill] sm:$0xff] }
 0x196   : > { %v1154_v6 = vmul.f32 1.442695, %v1109_v52  ;;  %vm598_vm13 = vcmp.ge.f32.partialorder %v3587_v49, 0.0  ;;  %v1043_v27 = vmul.f32 %v2754_v2, %v1011_v3  ;;  %v854_v9 = vmul.f32 %v2851_v0, %v822_v28  ;;  %v3590_v1 = vld [vmem:[#allocation27_spill] sm:$0xff]  ;;  %v3592_v28 = vld [vmem:[#allocation28_spill] sm:$0xff] }
 0x197   : > { %v792_v31 = vmul.f32 1.0614054, %v2892_v53  ;;  %v699_v11 = vmul.f32 0.3275911, %v2890_v23  ;;  %v2908_v17 = vmul.f32 %v1296_v33, %v3588_v46  ;;  %v916_v29 = vmul.f32 %v2814_v19, %v884_v21 }
 0x198   : > { %v2011_v24 = vpop.eup %2010  ;;  %2016 = vpow2.f32 %v1152_v25  ;;  %v823_v38 = vadd.f32 -1.4531521, %v791_v54  ;;  %v1266_v48 = vmul.f32 %v1234_v45, %v3590_v1  ;;  %v917_v52 = vmul.f32 %v2822_v32, %v885_v62 }
 0x199   : > { %3589 = vst [vmem:[#allocation17_spill] sm:$0xff] %v2908_v17  ;;  %v1110_v2 = vmul.f32 %v1078_v15, %v2749_v13  ;;  %v1079_v22 = vsub.f32 0.0, %v2777_v47  ;;  %v2916_v3 = vmul.f32 %v1297_v40, %v3591_v42  ;;  %2018 = vpow2.f32 %v1154_v6  ;;  %v3593_v15 = vld [vmem:[#allocation30_spill] sm:$0xff]  ;;  %v493_v6 = vpop.f32.mrf.mxu0 }
 0x19a   : > { %v2921_v33 = vsel %vm598_vm13, 1.0, %v3576_v50  ;;  %v2924_v43 = vmul.f32 0.5, %v3592_v28  ;;  %v1203_v25 = vmul.f32 %v2011_v24, %v1043_v27  ;;  %v886_v54 = vadd.f32 1.4214138, %v854_v9 }
 0x19b   : > { %v2926_v21 = vpop.eup %2012  ;;  %v824_v45 = vadd.f32 -1.4531521, %v792_v31  ;;  %v731_v13 = vadd.f32 1.0, %v699_v11  ;;  %v948_v62 = vadd.f32 -0.28449672, %v916_v29  ;;  %vm599_vm14 = vcmp.ge.f32.partialorder %v2758_v16, 0.0 }
 0x19c   : > { %v855_v56 = vmul.f32 %v2871_v36, %v823_v38  ;;  %v2931_v40 = vmul.f32 0.5, %v3593_v15  ;;  %v1298_v49 = vadd.f32 1.0, %v1266_v48  ;;  %v949_v46 = vadd.f32 -0.28449672, %v917_v52 }
 0x19d   : > { %v1156_v1 = vmul.f32 1.442695, %v1110_v2  ;;  %v1111_v42 = vmul.f32 %v1079_v22, %v2777_v47  ;;  %vm600_vm15 = vcmp.ge.f32.partialorder %v2772_v4, 0.0  ;;  %v1080_v27 = vsub.f32 0.0, %v2784_v35  ;;  %v495_v2 = vpop.f32.mrf.mxu0 }
 0x19e   : > { %v793_v9 = vmul.f32 1.0614054, %v2926_v21  ;;  %v2938_v31 = vadd.f32 %v491_v51, %v2450_v59  ;;  %v1235_v11 = vsub.f32 1.0, %v1203_v25  ;;  %v918_v24 = vmul.f32 %v2851_v0, %v886_v54  ;;  %v3594_v25 = vld [vmem:[#allocation23_spill] sm:$0xff] }
 0x19f   : > { %v856_v29 = vmul.f32 %v2892_v53, %v824_v45  ;;  %2020 = vrcp.f32 %v731_v13  ;;  %v980_v38 = vmul.f32 %v2814_v19, %v948_v62  ;;  %v2946_v47 = vsel %vm599_vm14, 1.0, %v3576_v50 }
 0x1a0   : > { %v887_v48 = vadd.f32 1.4214138, %v855_v56  ;;  %v1081_v52 = vsub.f32 0.0, %v2803_v39  ;;  %v981_v51 = vmul.f32 %v2822_v32, %v949_v46  ;;  %2022 = vpow2.f32 %v1156_v1 }
 0x1a1   : > { %v1158_v22 = vmul.f32 1.442695, %v1111_v42  ;;  %v2953_v28 = vsel %vm600_vm15, 1.0, %v3576_v50  ;;  %v2956_v54 = vmul.f32 %v1298_v49, %v3594_v25  ;;  %v1112_v16 = vmul.f32 %v1080_v27, %v2784_v35  ;;  %v2962_v62 = vpop.eup %2014 }
 0x1a2   : > { %v2960_v45 = vmul.f32 0.5, %v2781_v63  ;;  %v825_v13 = vadd.f32 -1.4531521, %v793_v9  ;;  %v1267_v56 = vmul.f32 %v1235_v11, %v2820_v8  ;;  %v950_v15 = vadd.f32 -0.28449672, %v918_v24  ;;  %v497_v63 = vpop.f32.mrf.mxu0 }
 0x1a3   : > { %3595 = vst [vmem:[#allocation25_spill] sm:$0xff] %v2956_v54  ;;  %v888_v46 = vadd.f32 1.4214138, %v856_v29  ;;  %v2966_v1 = vmul.f32 0.70710677, %v2938_v31  ;;  %v919_v42 = vmul.f32 %v2871_v36, %v887_v48  ;;  %v1113_v49 = vmul.f32 %v1081_v52, %v2803_v39 }
 0x1a4   : > { %v1012_v4 = vadd.f32 0.2548296, %v980_v38  ;;  %v2971_v35 = vmul.f32 0.5, %v2806_v26  ;;  %v1013_v9 = vadd.f32 0.2548296, %v981_v51  ;;  %2024 = vpow2.f32 %v1158_v22 }
 0x1a5   : > { %v2017_v27 = vpop.eup %2016  ;;  %vm601_vm0 = vcmp.ge.f32.partialorder %v2792_v30, 0.0  ;;  %v1082_v8 = vsub.f32 0.0, %v2843_v5  ;;  %v1160_v11 = vmul.f32 1.442695, %v1112_v16  ;;  %v857_v24 = vmul.f32 %v2926_v21, %v825_v13  ;;  %v2987_v13 = vpop.f32.mrf.mxu0 }
 0x1a6   : > { %3596 = vst [vmem:[#allocation26_spill] sm:$0xff] %v2971_v35  ;;  %vm602_vm1 = vcmp.ge.f32.partialorder %v2827_v61, 0.0  ;;  %v794_v29 = vmul.f32 1.0614054, %v2962_v62  ;;  %v2019_v38 = vpop.eup %2018  ;;  %v1299_v39 = vadd.f32 1.0, %v1267_v56  ;;  %v982_v26 = vmul.f32 %v2851_v0, %v950_v15 }
 0x1a7   : > { %v920_v48 = vmul.f32 %v2892_v53, %v888_v46  ;;  %v2981_v52 = vand.u32 2147483647, %v2966_v1  ;;  %v1044_v51 = vmul.f32 %v2814_v19, %v1012_v4  ;;  %v951_v22 = vadd.f32 -0.28449672, %v919_v42  ;;  %v3598_v42 = vld [vmem:[#allocation29_spill] sm:$0xff]  ;;  %v503_v61 = vpop.f32.mrf.mxu0 }
 0x1a8   : > { %v1162_v25 = vmul.f32 1.442695, %v1113_v49  ;;  %v2985_v16 = vadd.f32 %v493_v6, %v2462_v7  ;;  %v1045_v35 = vmul.f32 %v2822_v32, %v1013_v9  ;;  %v2993_v56 = vsel %vm601_vm0, 1.0, %v3576_v50 }
 0x1a9   : > { %v1114_v15 = vmul.f32 %v1082_v8, %v2843_v5  ;;  %v2997_v46 = vmul.f32 0.5, %v2849_v20  ;;  %2026 = vpow2.f32 %v1160_v11  ;;  %v889_v19 = vadd.f32 1.4214138, %v857_v24 }
 0x1aa   : > { %v3002_v6 = vsel %vm602_vm1, 1.0, %v3576_v50  ;;  %v826_v4 = vadd.f32 -1.4531521, %v794_v29  ;;  %v3005_v32 = vmul.f32 %v1299_v39, %v3598_v42  ;;  %v1014_v49 = vadd.f32 0.2548296, %v982_v26 }
 0x1ab   : > { %3597 = vst [vmem:[#allocation20_spill] sm:$0xff] %v2997_v46  ;;  %v952_v30 = vadd.f32 -0.28449672, %v920_v48  ;;  %v700_v9 = vmul.f32 0.3275911, %v2981_v52  ;;  %v1204_v5 = vmul.f32 %v2017_v27, %v1044_v51  ;;  %v983_v20 = vmul.f32 %v2871_v36, %v951_v22 }
 0x1ac   : > { %v3008_v54 = vpop.eup %2020  ;;  %2028 = vpow2.f32 %v1162_v25  ;;  %v3012_v8 = vmul.f32 0.70710677, %v2985_v16  ;;  %v1205_v11 = vmul.f32 %v2019_v38, %v1045_v35  ;;  %v1164_v24 = vmul.f32 1.442695, %v1114_v15 }
 0x1ad   : > { %v3015_v29 = vmul.f32 0.5, %v2938_v31  ;;  %v3018_v39 = vadd.f32 %v495_v2, %v2450_v59  ;;  %v2023_v26 = vpop.eup %2022  ;;  %v921_v48 = vmul.f32 %v2926_v21, %v889_v19  ;;  %v858_v27 = vmul.f32 %v2962_v62, %v826_v4  ;;  %v3033_v4 = vpop.f32.mrf.mxu0 }
 0x1ae   : > { %v1083_v51 = vsub.f32 0.0, %v2890_v23  ;;  %v3024_v22 = vadd.f32 %v497_v63, %v2462_v7  ;;  %v1046_v25 = vmul.f32 %v2851_v0, %v1014_v49  ;;  %v984_v35 = vmul.f32 %v2892_v53, %v952_v30 }
 0x1af   : > { %3599 = vst [vmem:[#allocation27_spill] sm:$0xff] %v3015_v29  ;;  %v795_v31 = vmul.f32 1.0614054, %v3008_v54  ;;  %v732_v38 = vadd.f32 1.0, %v700_v9  ;;  %v1236_v15 = vsub.f32 1.0, %v1204_v5  ;;  %vm603_vm2 = vcmp.ge.f32.partialorder %v2864_v44, 0.0  ;;  %v507_v55 = vpop.f32.mrf.mxu0 }
 0x1b0   : > { %v1015_v2 = vadd.f32 0.2548296, %v983_v20  ;;  %v3031_v19 = vand.u32 2147483647, %v3012_v8  ;;  %v1237_v42 = vsub.f32 1.0, %v1205_v11  ;;  %2030 = vpow2.f32 %v1164_v24 }
 0x1b1   : > { %vm604_vm3 = vcmp.ge.f32.partialorder %v2966_v1, 0.0  ;;  %v3037_v0 = vmul.f32 0.70710677, %v3018_v39  ;;  %v2025_v63 = vpop.eup %2024  ;;  %v953_v49 = vadd.f32 -0.28449672, %v921_v48  ;;  %v1115_v9 = vmul.f32 %v1083_v51, %v2890_v23 }
 0x1b2   : > { %v890_v30 = vadd.f32 1.4214138, %v858_v27  ;;  %v3041_v5 = vmul.f32 0.70710677, %v3024_v22  ;;  %v1206_v20 = vmul.f32 %v2023_v26, %v1046_v25  ;;  %v1016_v29 = vadd.f32 0.2548296, %v984_v35 }
 0x1b3   : > { %v827_v46 = vadd.f32 -1.4531521, %v795_v31  ;;  %2032 = vrcp.f32 %v732_v38  ;;  %v1268_v11 = vmul.f32 %v1236_v15, %v2876_v57  ;;  %v1047_v24 = vmul.f32 %v2871_v36, %v1015_v2 }
 0x1b4   : > { %v1084_v17 = vsub.f32 0.0, %v2981_v52  ;;  %v701_v34 = vmul.f32 0.3275911, %v3031_v19  ;;  %v1269_v48 = vmul.f32 %v1237_v42, %v2881_v14  ;;  %v3051_v23 = vsel %vm603_vm2, 1.0, %v3576_v50 }
 0x1b5   : > { %v3056_v26 = vsel %vm604_vm3, 1.0, %v3576_v50  ;;  %v3059_v57 = vand.u32 2147483647, %v3037_v0  ;;  %v985_v36 = vmul.f32 %v2926_v21, %v953_v49  ;;  %v922_v27 = vmul.f32 %v2962_v62, %v890_v30 }
 0x1b6   : > { %3600 = vst [vmem:[#allocation21_spill] sm:$0xff] %v3056_v26  ;;  %v1166_v51 = vmul.f32 1.442695, %v1115_v9  ;;  %v3064_v14 = vand.u32 2147483647, %v3041_v5  ;;  %v2027_v25 = vpop.eup %2026  ;;  %v1238_v44 = vsub.f32 1.0, %v1206_v20  ;;  %v1048_v35 = vmul.f32 %v2892_v53, %v1016_v29  ;;  %v3080_v29 = vpop.f32.mrf.mxu0 }
 0x1b7   : > { %v859_v31 = vmul.f32 %v3008_v54, %v827_v46  ;;  %v3069_v1 = vadd.f32 %v507_v55, %v2462_v7  ;;  %v1300_v38 = vadd.f32 1.0, %v1268_v11  ;;  %v1207_v15 = vmul.f32 %v2025_v63, %v1047_v24 }
 0x1b8   : > { %v1116_v2 = vmul.f32 %v1084_v17, %v2981_v52  ;;  %v733_v42 = vadd.f32 1.0, %v701_v34  ;;  %v1301_v30 = vadd.f32 1.0, %v1269_v48  ;;  %v3073_v9 = vmul.f32 0.5, %v2985_v16 }
 0x1b9   : > { %3601 = vst [vmem:[#allocation28_spill] sm:$0xff] %v3069_v1  ;;  %v2029_v49 = vpop.eup %2028  ;;  %v702_v26 = vmul.f32 0.3275911, %v3059_v57  ;;  %v3077_v20 = vadd.f32 %v503_v61, %v2462_v7  ;;  %v1017_v53 = vadd.f32 0.2548296, %v985_v36  ;;  %2034 = vpow2.f32 %v1166_v51 }
 0x1ba   : > { %3602 = vst [vmem:[#allocation30_spill] sm:$0xff] %v3073_v9  ;;  %v954_v46 = vadd.f32 -0.28449672, %v922_v27  ;;  %v703_v55 = vmul.f32 0.3275911, %v3064_v14  ;;  %v1270_v17 = vmul.f32 %v1238_v44, %v2921_v33  ;;  %v1208_v34 = vmul.f32 %v2027_v25, %v1048_v35  ;;  %v513_v35 = vpop.f32.mrf.mxu0 }
 0x1bb   : > { %3603 = vst [vmem:[#allocation23_spill] sm:$0xff] %v3077_v20  ;;  %v891_v52 = vadd.f32 1.4214138, %v859_v31  ;;  %v3084_v63 = vmul.f32 0.70710677, %v3069_v1  ;;  %v1239_v16 = vsub.f32 1.0, %v1207_v15  ;;  %2036 = vrcp.f32 %v733_v42 }
 0x1bc   : > { %v1168_v11 = vmul.f32 1.442695, %v1116_v2  ;;  %v1085_v61 = vsub.f32 0.0, %v3031_v19  ;;  %v3088_v24 = vmul.f32 %v1300_v38, %v2834_v60  ;;  %v3091_v48 = vmul.f32 %v1301_v30, %v2869_v58 }
 0x1bd   : > { %v734_v36 = vadd.f32 1.0, %v702_v26  ;;  %v3094_v27 = vmul.f32 0.70710677, %v3077_v20  ;;  %v2031_v33 = vpop.eup %2030  ;;  %v1049_v51 = vmul.f32 %v2926_v21, %v1017_v53  ;;  %v986_v25 = vmul.f32 %v2962_v62, %v954_v46 }
 0x1be   : > { %vm605_vm4 = vcmp.ge.f32.partialorder %v3012_v8, 0.0  ;;  %v735_v44 = vadd.f32 1.0, %v703_v55  ;;  %v1302_v31 = vadd.f32 1.0, %v1270_v17  ;;  %v1240_v15 = vsub.f32 1.0, %v1208_v34 }
 0x1bf   : > { %3604 = vst [vmem:[#allocation29_spill] sm:$0xff] %v3094_v27  ;;  %v923_v60 = vmul.f32 %v3008_v54, %v891_v52  ;;  %v3101_v58 = vand.u32 2147483647, %v3084_v63  ;;  %v1271_v38 = vmul.f32 %v1239_v16, %v2946_v47  ;;  %2038 = vpow2.f32 %v1168_v11 }
 0x1c0   : > { %v3103_v26 = vpop.eup %2032  ;;  %v1117_v21 = vmul.f32 %v1085_v61, %v3031_v19  ;;  %v3109_v2 = vadd.f32 %v3033_v4, %v2450_v59  ;;  %2040 = vrcp.f32 %v734_v36  ;;  %v3113_v42 = vadd.f32 %v2987_v13, %v2450_v59  ;;  %v515_v36 = vpop.f32.mrf.mxu0 }
 0x1c1   : > { %v3116_v30 = vand.u32 2147483647, %v3094_v27  ;;  %v3119_v53 = vadd.f32 %v513_v35, %v2462_v7  ;;  %v1209_v46 = vmul.f32 %v2029_v49, %v1049_v51  ;;  %v1018_v47 = vadd.f32 0.2548296, %v986_v25 }
 0x1c2   : > { %3605 = vst [vmem:[#allocation32_spill] sm:$0xff] %v3109_v2  ;;  %3606 = vst [vmem:[#allocation33_spill] sm:$0xff] %v3113_v42  ;;  %v3124_v19 = vsel %vm605_vm4, 1.0, %v3576_v50  ;;  %2042 = vrcp.f32 %v735_v44  ;;  %v1272_v4 = vmul.f32 %v1240_v15, %v2953_v28  ;;  %v955_v55 = vadd.f32 -0.28449672, %v923_v60 }
 0x1c3   : > { %3607 = vst [vmem:[#allocation34_spill] sm:$0xff] %v3119_v53  ;;  %v796_v13 = vmul.f32 1.0614054, %v3103_v26  ;;  %v707_v17 = vmul.f32 0.3275911, %v3101_v58  ;;  %v1303_v34 = vadd.f32 1.0, %v1271_v38  ;;  %v3136_v8 = vmul.f32 %v1302_v31, %v2899_v10 }
 0x1c4   : > { %v1170_v52 = vmul.f32 1.442695, %v1117_v21  ;;  %v3130_v16 = vmul.f32 0.5, %v3018_v39  ;;  %v3133_v49 = vmul.f32 0.70710677, %v3109_v2  ;;  %v1241_v51 = vsub.f32 1.0, %v1209_v46 }
 0x1c5   : > { %v3139_v11 = vmul.f32 0.70710677, %v3113_v42  ;;  %v705_v28 = vmul.f32 0.3275911, %v3116_v30  ;;  %v3143_v61 = vmul.f32 0.70710677, %v3119_v53  ;;  %v1050_v25 = vmul.f32 %v2962_v62, %v1018_v47 }
 0x1c6   : > { %3608 = vst [vmem:[#allocation35_spill] sm:$0xff] %v3130_v16  ;;  %3609 = vst [vmem:[#allocation36_spill] sm:$0xff] %v3133_v49  ;;  %vm606_vm5 = vcmp.ge.f32.partialorder %v3037_v0, 0.0  ;;  %v1086_v39 = vsub.f32 0.0, %v3059_v57  ;;  %v2035_v44 = vpop.eup %2034  ;;  %v1304_v35 = vadd.f32 1.0, %v1272_v4  ;;  %v987_v10 = vmul.f32 %v3008_v54, %v955_v55  ;;  %v3619_v16 = vld [vmem:[#allocation22_spill] sm:$0xff] }
 0x1c7   : > { %3610 = vst [vmem:[#allocation37_spill] sm:$0xff] %v3139_v11  ;;  %3611 = vst [vmem:[#allocation38_spill] sm:$0xff] %v3143_v61  ;;  %v828_v31 = vadd.f32 -1.4531521, %v796_v13  ;;  %v739_v15 = vadd.f32 1.0, %v707_v17  ;;  %v3150_v60 = vmul.f32 0.5, %v3024_v22  ;;  %v3157_v62 = vadd.f32 %v515_v36, %v2450_v59 }
 0x1c8   : > { %vm607_vm6 = vcmp.ge.f32.partialorder %v3041_v5, 0.0  ;;  %v3154_v38 = vand.u32 2147483647, %v3133_v49  ;;  %v3159_v0 = vpop.eup %2036  ;;  %v3162_v21 = vsel %vm606_vm5, 1.0, %v3576_v50  ;;  %v3165_v46 = vand.u32 2147483647, %v3139_v11 }
 0x1c9   : > { %3612 = vst [vmem:[#allocation39_spill] sm:$0xff] %v3150_v60  ;;  %3613 = vst [vmem:[#allocation40_spill] sm:$0xff] %v3157_v62  ;;  %v737_v47 = vadd.f32 1.0, %v705_v28  ;;  %v3168_v22 = vand.u32 2147483647, %v3143_v61  ;;  %v1273_v5 = vmul.f32 %v1241_v51, %v2993_v56  ;;  %v1210_v4 = vmul.f32 %v2031_v33, %v1050_v25 }
 0x1ca   : > { %3614 = vst [vmem:[#allocation41_spill] sm:$0xff] %v3162_v21  ;;  %v1118_v55 = vmul.f32 %v1086_v39, %v3059_v57  ;;  %v3174_v13 = vadd.f32 %v3080_v29, %v2450_v59  ;;  %v1019_v17 = vadd.f32 0.2548296, %v987_v10  ;;  %v860_v36 = vmul.f32 %v3103_v26, %v828_v31  ;;  %v3618_v10 = vld [vmem:[#allocation18_spill] sm:$0xff] }
 0x1cb   : > { %v3178_v42 = vsel %vm607_vm6, 1.0, %v3576_v50  ;;  %2044 = vrcp.f32 %v739_v15  ;;  %v3181_v28 = vmul.f32 %v1303_v34, %v2924_v43  ;;  %v797_v53 = vmul.f32 1.0614054, %v3159_v0 }
 0x1cc   : > { %3615 = vst [vmem:[#allocation42_spill] sm:$0xff] %v3174_v13  ;;  %v706_v56 = vmul.f32 0.3275911, %v3154_v38  ;;  %v3186_v57 = vmul.f32 0.70710677, %v3157_v62  ;;  %v3188_v33 = vpop.eup %2038  ;;  %v1087_v59 = vsub.f32 0.0, %v3064_v14  ;;  %2046 = vrcp.f32 %v737_v47 }
 0x1cd   : > { %v704_v29 = vmul.f32 0.3275911, %v3165_v46  ;;  %v709_v51 = vmul.f32 0.3275911, %v3168_v22  ;;  %v3193_v25 = vpop.eup %2040  ;;  %v1305_v43 = vadd.f32 1.0, %v1273_v5  ;;  %v1242_v34 = vsub.f32 1.0, %v1210_v4  ;;  %v517_v5 = vpop.f32.mrf.mxu0 }
 0x1ce   : > { %3616 = vst [vmem:[#allocation43_spill] sm:$0xff] %v3186_v57  ;;  %v3196_v39 = vmul.f32 0.70710677, %v3174_v13  ;;  %v777_v31 = vmul.f32 1.0614054, %v3618_v10  ;;  %2048 = vpow2.f32 %v1170_v52  ;;  %v1051_v47 = vmul.f32 %v3008_v54, %v1019_v17 }
 0x1cf   : > { %v3199_v15 = vpop.eup %2042  ;;  %v892_v62 = vadd.f32 1.4214138, %v860_v36  ;;  %v1172_v2 = vmul.f32 1.442695, %v1118_v55  ;;  %v779_v20 = vmul.f32 1.0614054, %v3619_v16  ;;  %v3207_v21 = vmul.f32 %v1304_v35, %v2931_v40 }
 0x1d0   : > { %3617 = vst [vmem:[#allocation44_spill] sm:$0xff] %v3196_v39  ;;  %v829_v61 = vadd.f32 -1.4531521, %v797_v53  ;;  %v738_v1 = vadd.f32 1.0, %v706_v56  ;;  %v3204_v49 = vand.u32 2147483647, %v3186_v57  ;;  %v1119_v54 = vmul.f32 %v1087_v59, %v3064_v14 }
 0x1d1   : > { %v736_v4 = vadd.f32 1.0, %v704_v29  ;;  %v741_v13 = vadd.f32 1.0, %v709_v51  ;;  %v809_v11 = vadd.f32 -1.4531521, %v777_v31  ;;  %v811_v9 = vadd.f32 -1.4531521, %v779_v20 }
 0x1d2   : > { %3620 = vst [vmem:[#allocation18_spill] sm:$0xff] %v3207_v21  ;;  %v798_v52 = vmul.f32 1.0614054, %v3193_v25  ;;  %v799_v55 = vmul.f32 1.0614054, %v3199_v15  ;;  %v3218_v56 = vadd.f32 %v517_v5, %v2462_v7  ;;  %v924_v20 = vmul.f32 %v3103_v26, %v892_v62  ;;  %v3623_v5 = vld [vmem:[#allocation12_spill] sm:$0xff] }
 0x1d3   : > { %v3212_v36 = vand.u32 2147483647, %v3196_v39  ;;  %v841_v53 = vmul.f32 %v3618_v10, %v809_v11  ;;  %v843_v17 = vmul.f32 %v3619_v16, %v811_v9  ;;  %v861_v40 = vmul.f32 %v3159_v0, %v829_v61 }
 0x1d4   : > { %3621 = vst [vmem:[#allocation22_spill] sm:$0xff] %v3218_v56  ;;  %2050 = vrcp.f32 %v738_v1  ;;  %v710_v35 = vmul.f32 0.3275911, %v3204_v49  ;;  %v1211_v29 = vmul.f32 %v2035_v44, %v1051_v47  ;;  %v830_v39 = vadd.f32 -1.4531521, %v798_v52 }
 0x1d5   : > { %2052 = vrcp.f32 %v741_v13  ;;  %v873_v51 = vadd.f32 1.4214138, %v841_v53  ;;  %v875_v31 = vadd.f32 1.4214138, %v843_v17  ;;  %v831_v14 = vadd.f32 -1.4531521, %v799_v55 }
 0x1d6   : > { %2054 = vrcp.f32 %v736_v4  ;;  %v708_v11 = vmul.f32 0.3275911, %v3212_v36  ;;  %v3225_v9 = vmul.f32 %v1305_v43, %v2960_v45  ;;  %v3230_v1 = vmul.f32 0.70710677, %v3218_v56 }
 0x1d7   : > { %v905_v7 = vmul.f32 %v3618_v10, %v873_v51  ;;  %v907_v62 = vmul.f32 %v3619_v16, %v875_v31  ;;  %v3235_v44 = vmul.f32 %v1242_v34, %v3002_v6  ;;  %v956_v13 = vadd.f32 -0.28449672, %v924_v20 }
 0x1d8   : > { %3622 = vst [vmem:[#allocation45_spill] sm:$0xff] %v3230_v1  ;;  %v3232_v61 = vpop.eup %2044  ;;  %v893_v59 = vadd.f32 1.4214138, %v861_v40  ;;  %v742_v47 = vadd.f32 1.0, %v710_v35  ;;  %vm587_vm7 = vcmp.ge.f32.partialorder %v3623_v5, 0.0  ;;  %2056 = vpow2.f32 %v1172_v2 }
 0x1d9   : > { %v1088_v45 = vsub.f32 0.0, %v3165_v46  ;;  %v937_v43 = vadd.f32 -0.28449672, %v905_v7  ;;  %v939_v4 = vadd.f32 -0.28449672, %v907_v62  ;;  %v3239_v52 = vpop.eup %2046  ;;  %v1243_v55 = vsub.f32 1.0, %v1211_v29 }
 0x1da   : > { %v862_v53 = vmul.f32 %v3193_v25, %v830_v39  ;;  %v863_v17 = vmul.f32 %v3199_v15, %v831_v14  ;;  %v740_v51 = vadd.f32 1.0, %v708_v11  ;;  %v803_v6 = vmul.f32 1.0614054, %v3232_v61 }
 0x1db   : > { %v969_v34 = vmul.f32 %v3618_v10, %v937_v43  ;;  %v971_v20 = vmul.f32 %v3619_v16, %v939_v4  ;;  %v3247_v2 = vand.u32 2147483647, %v3230_v1  ;;  %v3249_v40 = vpop.eup %2048  ;;  %v988_v35 = vmul.f32 %v3103_v26, %v956_v13 }
 0x1dc   : > { %v925_v29 = vmul.f32 %v3159_v0, %v893_v59  ;;  %v1174_v31 = vmul.f32 1.442695, %v1119_v54  ;;  %2058 = vrcp.f32 %v742_v47  ;;  %v1120_v39 = vmul.f32 %v1088_v45, %v3165_v46 }
 0x1dd   : > { %v801_v14 = vmul.f32 1.0614054, %v3239_v52  ;;  %v1001_v11 = vadd.f32 0.2548296, %v969_v34  ;;  %v1003_v7 = vadd.f32 0.2548296, %v971_v20  ;;  %v1275_v62 = vmul.f32 %v1243_v55, %v3051_v23 }
 0x1de   : > { %v894_v43 = vadd.f32 1.4214138, %v862_v53  ;;  %2060 = vrcp.f32 %v740_v51  ;;  %v711_v4 = vmul.f32 0.3275911, %v3247_v2  ;;  %v895_v56 = vadd.f32 1.4214138, %v863_v17 }
 0x1df   : > { %v835_v57 = vadd.f32 -1.4531521, %v803_v6  ;;  %v1033_v13 = vmul.f32 %v3618_v10, %v1001_v11  ;;  %v1035_v59 = vmul.f32 %v3619_v16, %v1003_v7  ;;  %v1020_v54 = vadd.f32 0.2548296, %v988_v35  ;;  %v3624_v23 = vld [vmem:[#allocation19_spill] sm:$0xff]  ;;  %v3625_v53 = vld [vmem:[#allocation24_spill] sm:$0xff] }
 0x1e0   : > { %v957_v47 = vadd.f32 -0.28449672, %v925_v29  ;;  %2062 = vpow2.f32 %v1174_v31  ;;  %v743_v46 = vadd.f32 1.0, %v711_v4  ;;  %v3261_v34 = vmul.f32 1.442695, %v1120_v39 }
 0x1e1   : > { %v3259_v45 = vpop.eup %2050  ;;  %v833_v20 = vadd.f32 -1.4531521, %v801_v14  ;;  %v1193_v55 = vmul.f32 %v3624_v23, %v1033_v13  ;;  %v1195_v51 = vmul.f32 %v3625_v53, %v1035_v59  ;;  %v3267_v17 = vadd.f32 1.0, %v1275_v62  ;;  %v3626_v13 = vld [vmem:[#allocation14_spill] sm:$0xff] }
 0x1e2   : > { %v3265_v21 = vpop.eup %2052  ;;  %v926_v10 = vmul.f32 %v3193_v25, %v894_v43  ;;  %v1089_v16 = vsub.f32 0.0, %v3116_v30  ;;  %2064 = vrcp.f32 %v743_v46  ;;  %v927_v35 = vmul.f32 %v3199_v15, %v895_v56 }
 0x1e3   : > { %v3271_v6 = vpop.eup %2054  ;;  %v867_v29 = vmul.f32 %v3232_v61, %v835_v57  ;;  %v1225_v31 = vsub.f32 1.0, %v1193_v55  ;;  %v1227_v39 = vsub.f32 1.0, %v1195_v51  ;;  %v989_v14 = vmul.f32 %v3159_v0, %v957_v47 }
 0x1e4   : > { %v802_v11 = vmul.f32 1.0614054, %v3259_v45  ;;  %v1091_v7 = vsub.f32 0.0, %v3101_v58  ;;  %v619_v62 = vsel %vm587_vm7, 1.0, %v3576_v50  ;;  %v865_v43 = vmul.f32 %v3239_v52, %v833_v20 }
 0x1e5   : > { %v805_v4 = vmul.f32 1.0614054, %v3265_v21  ;;  %v1257_v56 = vmul.f32 %v1225_v31, %v3626_v13  ;;  %v1259_v59 = vmul.f32 %v1227_v39, %v619_v62  ;;  %v3284_v57 = vpop.eup %2056  ;;  %v958_v46 = vadd.f32 -0.28449672, %v926_v10  ;;  %v3627_v13 = vld [vmem:[#allocation13_spill] sm:$0xff] }
 0x1e6   : > { %v800_v47 = vmul.f32 1.0614054, %v3271_v6  ;;  %v1121_v23 = vmul.f32 %v1089_v16, %v3116_v30  ;;  %v1090_v55 = vsub.f32 0.0, %v3154_v38  ;;  %v959_v53 = vadd.f32 -0.28449672, %v927_v35  ;;  %v3628_v30 = vld [vmem:[#allocation15_spill] sm:$0xff] }
 0x1e7   : > { %v899_v51 = vadd.f32 1.4214138, %v867_v29  ;;  %v1289_v5 = vadd.f32 1.0, %v1257_v56  ;;  %v1291_v1 = vadd.f32 1.0, %v1259_v59  ;;  %v3290_v20 = vmul.f32 %v3103_v26, %v1020_v54 }
 0x1e8   : > { %v1021_v60 = vadd.f32 0.2548296, %v989_v14  ;;  %v834_v50 = vadd.f32 -1.4531521, %v802_v11  ;;  %v1123_v31 = vmul.f32 %v1091_v7, %v3101_v58  ;;  %v897_v10 = vadd.f32 1.4214138, %v865_v43 }
 0x1e9   : > { %v3293_v39 = vpop.eup %2058  ;;  %v837_v62 = vadd.f32 -1.4531521, %v805_v4  ;;  %v1321_v27 = vmul.f32 %v1289_v5, %v3627_v13  ;;  %v1323_v16 = vmul.f32 %v1291_v1, %v3628_v30  ;;  %v990_v35 = vmul.f32 %v3193_v25, %v958_v46 }
 0x1ea   : > { %v832_v29 = vadd.f32 -1.4531521, %v800_v47  ;;  %v1178_v56 = vmul.f32 1.442695, %v1121_v23  ;;  %v1122_v59 = vmul.f32 %v1090_v55, %v3154_v38  ;;  %v991_v54 = vmul.f32 %v3199_v15, %v959_v53 }
 0x1eb   : > { %v3299_v26 = vpop.eup %2060  ;;  %v931_v58 = vmul.f32 %v3232_v61, %v899_v51  ;;  %v1353_v14 = vpack.c.bf16 %v1323_v16, %v1321_v27  ;;  %v1355_v11 = vpack.c.bf16 %v2895_v12, %v2846_v41  ;;  %v1053_v7 = vmul.f32 %v3159_v0, %v1021_v60 }
 0x1ec   : > { %v866_v1 = vmul.f32 %v3259_v45, %v834_v50  ;;  %v806_v43 = vmul.f32 1.0614054, %v3293_v39  ;;  %v1352_v4 = vpack.c.bf16 %v2831_v18, %v2811_v37  ;;  %v929_v46 = vmul.f32 %v3239_v52, %v897_v10 }
 0x1ed   : > { %v2063_v38 = vpop.eup %2062  ;;  %v1182_v47 = vmul.f32 1.442695, %v1123_v31  ;;  %v869_v23 = vmul.f32 %v3265_v21, %v837_v62  ;;  %1535 = vmatprep.mubr.bf16.mxu1 %v1353_v14  ;;  %v1095_v27 = vsub.f32 0.0, %v3247_v2  ;;  %v1022_v55 = vadd.f32 0.2548296, %v990_v35  ;;  %v3630_v14 = vld [vmem:[#allocation16_spill] sm:$0xff] }
 0x1ee   : > { %v864_v41 = vmul.f32 %v3271_v6, %v832_v29  ;;  %v1180_v12 = vmul.f32 1.442695, %v1122_v59  ;;  %v804_v50 = vmul.f32 1.0614054, %v3299_v26  ;;  %1536 = vmatmul.mubr.bf16.vlgmr.msra.gmra.mxu1 %v1352_v4  ;;  %v1023_v0 = vadd.f32 0.2548296, %v991_v54 }
 0x1ef   : > { %v3315_v60 = vpop.eup %2064  ;;  %2066 = vpow2.f32 %v3261_v34  ;;  %v963_v37 = vadd.f32 -0.28449672, %v931_v58  ;;  %v1093_v18 = vsub.f32 0.0, %v3168_v22  ;;  %1543 = vmatprep.mubr.bf16.mxu1 %v1355_v11  ;;  %v898_v53 = vadd.f32 1.4214138, %v866_v1 }
 0x1f0   : > { %2068 = vpow2.f32 %v1178_v56  ;;  %v838_v51 = vadd.f32 -1.4531521, %v806_v43  ;;  %v807_v5 = vmul.f32 1.0614054, %v3315_v60  ;;  %v961_v31 = vadd.f32 -0.28449672, %v929_v46 }
 0x1f1   : > { %2070 = vpow2.f32 %v1182_v47  ;;  %v901_v10 = vadd.f32 1.4214138, %v869_v23  ;;  %v1127_v62 = vmul.f32 %v1095_v27, %v3247_v2  ;;  %v3322_v13 = vmul.f32 %v3249_v40, %v1053_v7  ;;  %v3629_v40 = vld [vmem:[#allocation31_spill] sm:$0xff] }
 0x1f2   : > { %v896_v30 = vadd.f32 1.4214138, %v864_v41  ;;  %v836_v16 = vadd.f32 -1.4531521, %v804_v50  ;;  %v839_v34 = vadd.f32 -1.4531521, %v807_v5  ;;  %v1055_v35 = vmul.f32 %v3199_v15, %v1023_v0 }
 0x1f3   : > { %v995_v29 = vmul.f32 %v3232_v61, %v963_v37  ;;  %v1125_v56 = vmul.f32 %v1093_v18, %v3168_v22  ;;  %v1357_v59 = vpack.c.bf16 %v3005_v32, %v2916_v3  ;;  %v930_v54 = vmul.f32 %v3259_v45, %v898_v53 }
 0x1f4   : > { %v870_v58 = vmul.f32 %v3293_v39, %v838_v51  ;;  %v871_v2 = vmul.f32 %v3315_v60, %v839_v34  ;;  %v1354_v11 = vpack.c.bf16 %v3630_v14, %v3629_v40  ;;  %v993_v7 = vmul.f32 %v3239_v52, %v961_v31  ;;  %v3632_v34 = vld [vmem:[#allocation25_spill] sm:$0xff]  ;;  %v3633_v40 = vld [vmem:[#allocation20_spill] sm:$0xff] }
 0x1f5   : > { %v1092_v15 = vsub.f32 0.0, %v3212_v36  ;;  %v933_v1 = vmul.f32 %v3265_v21, %v901_v10  ;;  %v1190_v43 = vmul.f32 1.442695, %v1127_v62  ;;  %v928_v22 = vmul.f32 %v3271_v6, %v896_v30 }
 0x1f6   : > { %v868_v3 = vmul.f32 %v3299_v26, %v836_v16  ;;  %v1094_v32 = vsub.f32 0.0, %v3204_v49  ;;  %v903_v4 = vadd.f32 1.4214138, %v871_v2  ;;  %1544 = vmatmul.mubr.bf16.gmra.mxu1 %v1354_v11  ;;  %v1215_v46 = vmul.f32 %v2063_v38, %v1055_v35  ;;  %v3631_v16 = vld [vmem:[#allocation17_spill] sm:$0xff] }
 0x1f7   : > { %2072 = vpow2.f32 %v1180_v12  ;;  %v1027_v47 = vadd.f32 0.2548296, %v995_v29  ;;  %v1186_v23 = vmul.f32 1.442695, %v1125_v56  ;;  %1551 = vmatprep.mubr.bf16.mxu1 %v1357_v59  ;;  %v1054_v27 = vmul.f32 %v3193_v25, %v1022_v55 }
 0x1f8   : > { %v962_v41 = vadd.f32 -0.28449672, %v930_v54  ;;  %v902_v50 = vadd.f32 1.4214138, %v870_v58  ;;  %v935_v0 = vmul.f32 %v3315_v60, %v903_v4  ;;  %v1025_v37 = vadd.f32 0.2548296, %v993_v7 }
 0x1f9   : > { %v1124_v18 = vmul.f32 %v1092_v15, %v3212_v36  ;;  %v965_v53 = vadd.f32 -0.28449672, %v933_v1  ;;  %2074 = vpow2.f32 %v1190_v43  ;;  %v960_v51 = vadd.f32 -0.28449672, %v928_v22 }
 0x1fa   : > { %v900_v5 = vadd.f32 1.4214138, %v868_v3  ;;  %v1126_v31 = vmul.f32 %v1094_v32, %v3204_v49  ;;  %v967_v38 = vadd.f32 -0.28449672, %v935_v0  ;;  %v1247_v12 = vsub.f32 1.0, %v1215_v46 }
 0x1fb   : > { %v1059_v10 = vmul.f32 %v3232_v61, %v1027_v47  ;;  %2076 = vpow2.f32 %v1186_v23  ;;  %v1359_v25 = vpack.c.bf16 %v3181_v28, %v3091_v48  ;;  %v994_v62 = vmul.f32 %v3259_v45, %v962_v41  ;;  %v3634_v41 = vld [vmem:[#allocation29_spill] sm:$0xff] }
 0x1fc   : > { %v3347_v55 = vpop.eup %2066  ;;  %v934_v36 = vmul.f32 %v3293_v39, %v902_v50  ;;  %v999_v30 = vmul.f32 %v3315_v60, %v967_v38  ;;  %v1356_v35 = vpack.c.bf16 %v3632_v34, %v3631_v16  ;;  %v1306_v29 = vadd.f32 1.0, %v3235_v44 }
 0x1fd   : > { %v2069_v49 = vpop.eup %2068  ;;  %v1245_v61 = vsub.f32 1.0, %v3322_v13  ;;  %v1057_v56 = vmul.f32 %v3239_v52, %v1025_v37  ;;  %v997_v48 = vmul.f32 %v3265_v21, %v965_v53  ;;  %v1214_v59 = vmul.f32 %v3284_v57, %v1054_v27 }
 0x1fe   : > { %v2071_v28 = vpop.eup %2070  ;;  %v992_v54 = vmul.f32 %v3271_v6, %v960_v51  ;;  %v932_v58 = vmul.f32 %v3299_v26, %v900_v5  ;;  %v1188_v2 = vmul.f32 1.442695, %v1126_v31  ;;  %1552 = vmatmul.mubr.bf16.gmra.mxu1 %v1356_v35  ;;  %v1339_v14 = vmul.f32 %v3267_v17, %v3633_v40  ;;  %v3636_v51 = vld [vmem:[#allocation26_spill] sm:$0xff]  ;;  %v3641_v35 = vld [vmem:[#allocation21_spill] sm:$0xff] }
 0x1ff   : > { %v1279_v44 = vmul.f32 %v1247_v12, %v3178_v42  ;;  %v1219_v11 = vmul.f32 %v2071_v28, %v1059_v10  ;;  %v1031_v13 = vadd.f32 0.2548296, %v999_v30  ;;  %1559 = vmatprep.mubr.bf16.mxu1 %v1359_v25  ;;  %v1212_v52 = vmul.f32 %v3188_v33, %v3290_v20  ;;  %v3640_v30 = vld [vmem:[#allocation37_spill] sm:$0xff] }
 0x200   : > { %v1026_v7 = vadd.f32 0.2548296, %v994_v62  ;;  %v1184_v15 = vmul.f32 1.442695, %v1124_v18  ;;  %v966_v57 = vadd.f32 -0.28449672, %v934_v36  ;;  %v1277_v1 = vmul.f32 %v1245_v61, %v3124_v19 }
 0x201   : > { %v1217_v43 = vmul.f32 %v2069_v49, %v1057_v56  ;;  %vm611_vm8 = vcmp.ge.f32.partialorder %v3084_v63, 0.0  ;;  %v1029_v22 = vadd.f32 0.2548296, %v997_v48  ;;  %v1246_v3 = vsub.f32 1.0, %v1214_v59  ;;  %v3639_v62 = vld [vmem:[#allocation30_spill] sm:$0xff]  ;;  %v3642_v61 = vld [vmem:[#allocation36_spill] sm:$0xff] }
 0x202   : > { %v1024_v32 = vadd.f32 0.2548296, %v992_v54  ;;  %v964_v17 = vadd.f32 -0.28449672, %v932_v58  ;;  %2078 = vpow2.f32 %v1188_v2  ;;  %v1311_v42 = vadd.f32 1.0, %v1279_v44  ;;  %v3643_v28 = vld [vmem:[#allocation45_spill] sm:$0xff] }
 0x203   : > { %v1251_v4 = vsub.f32 1.0, %v1219_v11  ;;  %v1063_v46 = vmul.f32 %v3315_v60, %v1031_v13  ;;  %v1361_v47 = vpack.c.bf16 %v1339_v14, %v3225_v9  ;;  %v1058_v20 = vmul.f32 %v3259_v45, %v1026_v7  ;;  %v3644_v14 = vld [vmem:[#allocation18_spill] sm:$0xff]  ;;  %v3645_v13 = vld [vmem:[#allocation28_spill] sm:$0xff] }
 0x204   : > { %v2073_v33 = vpop.eup %2072  ;;  %2080 = vpow2.f32 %v1184_v15  ;;  %v998_v19 = vmul.f32 %v3293_v39, %v966_v57  ;;  %v1358_v23 = vpack.c.bf16 %v3136_v8, %v3088_v24  ;;  %v1309_v27 = vadd.f32 1.0, %v1277_v1  ;;  %v3637_v24 = vld [vmem:[#allocation39_spill] sm:$0xff]  ;;  %v3646_v7 = vld [vmem:[#allocation38_spill] sm:$0xff] }
 0x205   : > { %vm609_vm9 = vcmp.ge.f32.partialorder %v3634_v41, 0.0  ;;  %v1249_v50 = vsub.f32 1.0, %v1217_v43  ;;  %v1061_v0 = vmul.f32 %v3265_v21, %v1029_v22  ;;  %v1244_v18 = vsub.f32 1.0, %v1212_v52  ;;  %v3638_v21 = vld [vmem:[#allocation41_spill] sm:$0xff]  ;;  %v3649_v41 = vld [vmem:[#allocation27_spill] sm:$0xff] }
 0x206   : > { %v2075_v37 = vpop.eup %2074  ;;  %v1056_v60 = vmul.f32 %v3271_v6, %v1024_v32  ;;  %v3635_v9 = vmov -1.0   ;;  %v996_v53 = vmul.f32 %v3299_v26, %v964_v17  ;;  %1560 = vmatmul.mubr.bf16.gmra.mxu1 %v1358_v23  ;;  %v1338_v5 = vmul.f32 %v1306_v29, %v3636_v51 }
 0x207   : > { %v643_v45 = vsel %vm611_vm8, 1.0, %v3635_v9  ;;  %v1343_v8 = vmul.f32 %v1311_v42, %v3637_v24  ;;  %v1223_v38 = vmul.f32 %v2075_v37, %v1063_v46  ;;  %1567 = vmatprep.mubr.bf16.mxu1 %v1361_v47  ;;  %v1278_v10 = vmul.f32 %v1246_v3, %v3638_v21  ;;  %v3647_v3 = vld [vmem:[#allocation23_spill] sm:$0xff] }
 0x208   : > { %v1283_v31 = vmul.f32 %v1251_v4, %v643_v45  ;;  %v2077_v12 = vpop.eup %2076  ;;  %v641_v6 = vsel %vm609_vm9, 1.0, %v3635_v9  ;;  %v1218_v25 = vmul.f32 %v2073_v33, %v1058_v20  ;;  %v1030_v63 = vadd.f32 0.2548296, %v998_v19  ;;  %v3648_v4 = vld [vmem:[#allocation35_spill] sm:$0xff] }
 0x209   : > { %v1341_v36 = vmul.f32 %v1309_v27, %v3639_v62  ;;  %vm608_vm10 = vcmp.ge.f32.partialorder %v3640_v30, 0.0  ;;  %v1281_v16 = vmul.f32 %v1249_v50, %v641_v6  ;;  %v1221_v34 = vmul.f32 %v2077_v12, %v1061_v0  ;;  %v3652_v12 = vld [vmem:[#allocation32_spill] sm:$0xff]  ;;  %v3655_v30 = vld [vmem:[#allocation33_spill] sm:$0xff] }
 0x20a   : > { %v1276_v49 = vmul.f32 %v1244_v18, %v3641_v35  ;;  %v1216_v29 = vmul.f32 %v3347_v55, %v1056_v60  ;;  %vm610_vm11 = vcmp.ge.f32.partialorder %v3642_v61, 0.0  ;;  %v1028_v56 = vadd.f32 0.2548296, %v996_v53  ;;  %v3650_v53 = vld [vmem:[#allocation43_spill] sm:$0xff] }
 0x20b   : > { %v1315_v48 = vadd.f32 1.0, %v1283_v31  ;;  %vm615_vm12 = vcmp.ge.f32.partialorder %v3643_v28, 0.0  ;;  %v1255_v59 = vsub.f32 1.0, %v1223_v38  ;;  %v1363_v54 = vpack.c.bf16 %v1343_v8, %v1341_v36  ;;  %v3651_v8 = vld [vmem:[#allocation22_spill] sm:$0xff] }
 0x20c   : > { %v1310_v58 = vadd.f32 1.0, %v1278_v10  ;;  %v1250_v2 = vsub.f32 1.0, %v1218_v25  ;;  %v1062_v40 = vmul.f32 %v3293_v39, %v1030_v63  ;;  %v1360_v44 = vpack.c.bf16 %v1338_v5, %v3644_v14  ;;  %v3653_v10 = vld [vmem:[#allocation44_spill] sm:$0xff]  ;;  %v3654_v25 = vld [vmem:[#allocation34_spill] sm:$0xff] }
 0x20d   : > { %v1313_v11 = vadd.f32 1.0, %v1281_v16  ;;  %v547_v52 = vmul.f32 0.5, %v3645_v13  ;;  %vm613_vm13 = vcmp.ge.f32.partialorder %v3646_v7, 0.0  ;;  %v1253_v55 = vsub.f32 1.0, %v1221_v34 }
 0x20e   : > { %v1308_v15 = vadd.f32 1.0, %v1276_v49  ;;  %v1248_v57 = vsub.f32 1.0, %v1216_v29  ;;  %v1060_v1 = vmul.f32 %v3299_v26, %v1028_v56  ;;  %v647_v43 = vsel %vm615_vm12, 1.0, %v3635_v9  ;;  %1568 = vmatmul.mubr.bf16.gmra.mxu1 %v1360_v44 }
 0x20f   : > { %v2079_v22 = vpop.eup %2078  ;;  %v545_v32 = vmul.f32 0.5, %v3647_v3  ;;  %v642_v39 = vsel %vm610_vm11, 1.0, %v3635_v9  ;;  %v1347_v17 = vmul.f32 %v1315_v48, %v547_v52  ;;  %v1287_v42 = vmul.f32 %v1255_v59, %v647_v43  ;;  %1575 = vmatprep.mubr.bf16.mxu1 %v1363_v54 }
 0x210   : > { %v1342_v46 = vmul.f32 %v1310_v58, %v3648_v4  ;;  %v1282_v47 = vmul.f32 %v1250_v2, %v642_v39  ;;  %v645_v33 = vsel %vm613_vm13, 1.0, %v3635_v9  ;;  %v1222_v20 = vmul.f32 %v2079_v22, %v1062_v40  ;;  %v3656_v58 = vld [vmem:[#allocation40_spill] sm:$0xff]  ;;  %v3657_v40 = vld [vmem:[#allocation42_spill] sm:$0xff] }
 0x211   : > { %v2081_v26 = vpop.eup %2080  ;;  %v640_v19 = vsel %vm608_vm10, 1.0, %v3635_v9  ;;  %v1345_v23 = vmul.f32 %v1313_v11, %v545_v32  ;;  %v1285_v27 = vmul.f32 %v1253_v55, %v645_v33  ;;  %v1340_v50 = vmul.f32 %v1308_v15, %v3649_v41 }
 0x212   : > { %v1280_v0 = vmul.f32 %v1248_v57, %v640_v19  ;;  %v1220_v37 = vmul.f32 %v2081_v26, %v1060_v1  ;;  %v1319_v18 = vadd.f32 1.0, %v1287_v42  ;;  %v1314_v45 = vadd.f32 1.0, %v1282_v47 }
 0x213   : > { %v1365_v60 = vpack.c.bf16 %v1347_v17, %v1345_v23  ;;  %vm614_vm14 = vcmp.ge.f32.partialorder %v3650_v53, 0.0  ;;  %v1254_v51 = vsub.f32 1.0, %v1222_v20  ;;  %v1362_v5 = vpack.c.bf16 %v1342_v46, %v1340_v50 }
 0x214   : > { %v1317_v24 = vadd.f32 1.0, %v1285_v27  ;;  %v551_v31 = vmul.f32 0.5, %v3651_v8  ;;  %v1312_v38 = vadd.f32 1.0, %v1280_v0  ;;  %v546_v21 = vmul.f32 0.5, %v3652_v12 }
 0x215   : > { %vm612_vm15 = vcmp.ge.f32.partialorder %v3653_v10, 0.0  ;;  %v1252_v6 = vsub.f32 1.0, %v1220_v37  ;;  %v549_v63 = vmul.f32 0.5, %v3654_v25  ;;  %v646_v62 = vsel %vm614_vm14, 1.0, %v3635_v9 }
 0x216   : > { %1576 = vmatmul.mubr.bf16.gmra.mxu1 %v1362_v5  ;;  %v1351_v36 = vmul.f32 %v1319_v18, %v551_v31  ;;  %v544_v16 = vmul.f32 0.5, %v3655_v30  ;;  %v1346_v34 = vmul.f32 %v1314_v45, %v546_v21  ;;  %v1286_v35 = vmul.f32 %v1254_v51, %v646_v62 }
 0x217   : > { %1583 = vmatprep.mubr.bf16.mxu1 %v1365_v60  ;;  %v644_v49 = vsel %vm612_vm15, 1.0, %v3635_v9  ;;  %v1349_v29 = vmul.f32 %v1317_v24, %v549_v63  ;;  %v550_v2 = vmul.f32 0.5, %v3656_v58  ;;  %v548_v14 = vmul.f32 0.5, %v3657_v40  ;;  %v3422_v9 = vld [vmem:[%s3514_s4] ss:$0 sm:$0xff] }
 0x218   : > { %v1344_v61 = vmul.f32 %v1312_v38, %v544_v16  ;;  %v1284_v56 = vmul.f32 %v1252_v6, %v644_v49  ;;  %v1318_v28 = vadd.f32 1.0, %v1286_v35 }
 0x219   : > { %v1367_v48 = vpack.c.bf16 %v1351_v36, %v1349_v29 }
 0x21a   : > { %v1364_v59 = vpack.c.bf16 %v1346_v34, %v1344_v61  ;;  %v1316_v54 = vadd.f32 1.0, %v1284_v56  ;;  %v1350_v44 = vmul.f32 %v1318_v28, %v550_v2 }
 0x21c   : > { %v1348_v11 = vmul.f32 %v1316_v54, %v548_v14 }
 0x21e   : > { %1584 = vmatmul.mubr.bf16.gmra.mxu1 %v1364_v59  ;;  %v1366_v13 = vpack.c.bf16 %v1350_v44, %v1348_v11 }
 0x21f   : > { %1591 = vmatprep.mubr.bf16.mxu1 %v1367_v48 }
 0x226   : > { %1592 = vmatmul.mubr.bf16.gmra.mxu1 %v1366_v13 }
 0x2ae   : > { %v1791_v52 = vpop.f32.mrf.mxu1 }
 0x2b0   : > { %v1792_v7 = vpop.f32.mrf.mxu1 }
 0x2b1   : > { %v1793_v55 = vadd.f32 %v1792_v7, %v1791_v52 }
 0x2b2   : > { %v1794_v15 = vpop.f32.mrf.mxu1 }
 0x2b3   : > { %v1538_v57 = vadd.f32 %v1793_v55, %v3422_v9 }
 0x2b4   : > { %v1795_v1 = vpop.f32.mrf.mxu1 }
 0x2b5   : > { %1600 = vst [vmem:[%s3427_s14] sm:$0xff] %v1538_v57  ;;  %v1796_v43 = vadd.f32 %v1795_v1, %v1794_v15 }
 0x2b6   : > { %v1797_v22 = vpop.f32.mrf.mxu1 }
 0x2b7   : > { %v1541_v3 = vadd.f32 %v1796_v43, %v3422_v9 }
 0x2b8   : > { %v1798_v32 = vpop.f32.mrf.mxu1 }
 0x2b9   : > { %1601 = vst [vmem:[%s3427_s14 + $0x8] sm:$0xff] %v1541_v3  ;;  %v1799_v39 = vadd.f32 %v1798_v32, %v1797_v22 }
 0x2ba   : > { %v1800_v17 = vpop.f32.mrf.mxu1 }
 0x2bb   : > { %v1546_v42 = vadd.f32 %v1799_v39, %v3422_v9 }
 0x2bc   : > { %v1801_v4 = vpop.f32.mrf.mxu1 }
 0x2bd   : > { %1602 = vst [vmem:[%s3427_s14 + $0x10] sm:$0xff] %v1546_v42  ;;  %v1802_v46 = vadd.f32 %v1801_v4, %v1800_v17 }
 0x2be   : > { %v1803_v47 = vpop.f32.mrf.mxu1 }
 0x2bf   : > { %v1549_v33 = vadd.f32 %v1802_v46, %v3422_v9 }
 0x2c0   : > { %v1804_v20 = vpop.f32.mrf.mxu1 }
 0x2c1   : > { %1603 = vst [vmem:[%s3427_s14 + $0x18] sm:$0xff] %v1549_v33  ;;  %v1805_v26 = vadd.f32 %v1804_v20, %v1803_v47 }
 0x2c2   : > { %v1806_v19 = vpop.f32.mrf.mxu1 }
 0x2c3   : > { %v1554_v23 = vadd.f32 %v1805_v26, %v3422_v9 }
 0x2c4   : > { %v1807_v27 = vpop.f32.mrf.mxu1 }
 0x2c5   : > { %1604 = vst [vmem:[%s3427_s14 + $0x20] sm:$0xff] %v1554_v23  ;;  %v1808_v41 = vadd.f32 %v1807_v27, %v1806_v19 }
 0x2c6   : > { %v1809_v50 = vpop.f32.mrf.mxu1 }
 0x2c7   : > { %v1557_v0 = vadd.f32 %v1808_v41, %v3422_v9 }
 0x2c8   : > { %v1810_v37 = vpop.f32.mrf.mxu1 }
 0x2c9   : > { %1605 = vst [vmem:[%s3427_s14 + $0x28] sm:$0xff] %v1557_v0  ;;  %v1811_v18 = vadd.f32 %v1810_v37, %v1809_v50 }
 0x2ca   : > { %v1812_v60 = vpop.f32.mrf.mxu1 }
 0x2cb   : > { %v1562_v45 = vadd.f32 %v1811_v18, %v3422_v9 }
 0x2cc   : > { %v1813_v53 = vpop.f32.mrf.mxu1 }
 0x2cd   : > { %1606 = vst [vmem:[%s3427_s14 + $0x30] sm:$0xff] %v1562_v45  ;;  %v1814_v51 = vadd.f32 %v1813_v53, %v1812_v60 }
 0x2ce   : > { %v1815_v5 = vpop.f32.mrf.mxu1 }
 0x2cf   : > { %v1565_v24 = vadd.f32 %v1814_v51, %v3422_v9 }
 0x2d0   : > { %v1816_v8 = vpop.f32.mrf.mxu1 }
 0x2d1   : > { %1607 = vst [vmem:[%s3427_s14 + $0x38] sm:$0xff] %v1565_v24  ;;  %v1817_v31 = vadd.f32 %v1816_v8, %v1815_v5 }
 0x2d2   : > { %v1818_v38 = vpop.f32.mrf.mxu1 }
 0x2d3   : > { %v1570_v12 = vadd.f32 %v1817_v31, %v3422_v9 }
 0x2d4   : > { %v1819_v21 = vpop.f32.mrf.mxu1 }
 0x2d5   : > { %1608 = vst [vmem:[%s3427_s14 + $0x40] sm:$0xff] %v1570_v12  ;;  %v1820_v10 = vadd.f32 %v1819_v21, %v1818_v38 }
 0x2d6   : > { %v1821_v6 = vpop.f32.mrf.mxu1 }
 0x2d7   : > { %v1573_v25 = vadd.f32 %v1820_v10, %v3422_v9 }
 0x2d8   : > { %v1822_v63 = vpop.f32.mrf.mxu1 }
 0x2d9   : > { %1609 = vst [vmem:[%s3427_s14 + $0x48] sm:$0xff] %v1573_v25  ;;  %v1823_v62 = vadd.f32 %v1822_v63, %v1821_v6 }
 0x2da   : > { %v1824_v36 = vpop.f32.mrf.mxu1 }
 0x2db   : > { %v1578_v30 = vadd.f32 %v1823_v62, %v3422_v9 }
 0x2dc   : > { %v1825_v16 = vpop.f32.mrf.mxu1 }
 0x2dd   : > { %1610 = vst [vmem:[%s3427_s14 + $0x50] sm:$0xff] %v1578_v30  ;;  %v1826_v34 = vadd.f32 %v1825_v16, %v1824_v36 }
 0x2de   : > { %v1827_v35 = vpop.f32.mrf.mxu1 }
 0x2df   : > { %v1581_v49 = vadd.f32 %v1826_v34, %v3422_v9 }
 0x2e0   : > { %v1828_v29 = vpop.f32.mrf.mxu1 }
 0x2e1   : > { %1611 = vst [vmem:[%s3427_s14 + $0x58] sm:$0xff] %v1581_v49  ;;  %v1829_v61 = vadd.f32 %v1828_v29, %v1827_v35 }
 0x2e2   : > { %v1830_v56 = vpop.f32.mrf.mxu1 }
 0x2e3   : > { %v1586_v48 = vadd.f32 %v1829_v61, %v3422_v9 }
 0x2e4   : > { %v1831_v28 = vpop.f32.mrf.mxu1 }
 0x2e5   : > { %1612 = vst [vmem:[%s3427_s14 + $0x60] sm:$0xff] %v1586_v48  ;;  %v1832_v59 = vadd.f32 %v1831_v28, %v1830_v56 }
 0x2e6   : > { %v1833_v54 = vpop.f32.mrf.mxu1 }
 0x2e7   : > { %v1589_v58 = vadd.f32 %v1832_v59, %v3422_v9 }
 0x2e8   : > { %v1834_v2 = vpop.f32.mrf.mxu1 }
 0x2e9   : > { %1613 = vst [vmem:[%s3427_s14 + $0x68] sm:$0xff] %v1589_v58  ;;  %v1835_v40 = vadd.f32 %v1834_v2, %v1833_v54 }
 0x2ea   : > { %v1836_v14 = vpop.f32.mrf.mxu1 }
 0x2eb   : > { %v1594_v44 = vadd.f32 %v1835_v40, %v3422_v9 }
 0x2ec   : > { %v1837_v11 = vpop.f32.mrf.mxu1 }
 0x2ed   : > { %1614 = vst [vmem:[%s3427_s14 + $0x70] sm:$0xff] %v1594_v44  ;;  %v1838_v13 = vadd.f32 %v1837_v11, %v1836_v14 }
 0x2ef   : > { %v1597_v52 = vadd.f32 %v1838_v13, %v3422_v9 }
 0x2f1   : > { %1615 = vst [vmem:[%s3427_s14 + $0x78] sm:$0xff] %v1597_v52 }
 0x2f2   : > { %2175 = shalt.err (!%p2172_p3)
}
 0x2f3   : > { %s2176_s15 = scalar_lea.hbm %s3463_s13, 2048  ;;  %s2180_s9 = scalar_lea.hbm %s3515_s5, 4096 }
 0x2f4   : > { %p2177_p11 = scmp.ne.s32.totalorder %s3463_s13, %s2176_s15  ;;  %p2181_p4 = scmp.lt.s32.totalorder %s3463_s13, %s3515_s5 }
 0x2f5   : > { %p2182_p6 = scmp.lt.s32.totalorder %s2180_s9, %s2176_s15 }
 0x2f6   : > { %p2178_p9 = pnand %p2177_p11, %p3658_p2 }
 0x2f7   : > { %p2183_p8 = por %p2182_p6, %p2181_p4 }
 0x2f8   : > { %p2179_p1 = pneg %p2178_p9 }
 0x2fa   : > { %p2184_p10 = pnand %p2183_p8, %p2179_p1 }
 0x2fc   : > { %2187 = shalt.err (!%p2184_p10)
}
 0x2fd   : > { %s2242_s16 = smov 128   ;;  %s2243_s11 = smov 8  }
 0x2fe   : > { %1849 = dma.vmem_to_hbm [thread:$0]  (%p3658_p2), %s3465_s10, 2048, %s3463_s13, %s1617_s27, %s2242_s16, %s2242_s16, %s2243_s11  }
 0x2ff PF: > { %s1645_s29 = sand.u32 1, %s2218_s18   ;;  %p3659_p7 = scmp.ne.s32.totalorder %s3552_s25, 0 }
 0x300   : > { %p3660_p12 = scmp.ge.s32.totalorder %s2230_s21, 2  ;;  %s1646_s23 = scalar_lea.sflag [#allocation4], %s1645_s29 }
 0x302   : > { %p1863_p13 = pnand %p3660_p12, %p3659_p7 }
 0x304   : > { %p1864_p0 = pneg %p1863_p13 }
 0x306   : > { %2213 = dma.done.wait (%p1864_p0), %s1646_s23, 2048  }
 0x307   : > { %2215 = vsyncadd (%p1864_p0), %s1646_s23, 4294965248  ;;  %p19_p5 = scmp.ge.s32.totalorder %s2349_s17, 4   ;;  %s3661_s18 = smov %s2222_s19 }
 0x308   : > { %s3662_s19 = smov %s2226_s20  ;;  %s3663_s20 = smov %s2358_s28 }
 0x309   : > { %s3664_s21 = smov %s2349_s17  ;;  %21 = sbr.rel (!%p19_p5) target bundleno = 6 (0x6), region = 93 }
 0x30e   :  { %1651 = vsyncpa [#allocation3], 1 }
 0x30f   :  { %1653 = vsyncpa [#allocation3 + $0x1], 1 }
 0x310   :  { %1654 = vsyncpa [#allocation6], 1 }
 0x311   :  { %1655 = vsyncpa [#allocation4], 1 }
 0x312   :  { %1657 = vsyncpa [#allocation4 + $0x1], 1 }

</bundles_post_ra>
